<compile_context>
chip_gen: v7x
topology: tpu7x:2x2x1
jax: 0.10.0
libtpu: 0.0.40
codegen_flags: <defaults>
</compile_context>

<pallas_src>
import functools

import jax
import jax.numpy as jnp
from jax import lax
from jax.experimental import pallas as pl
from jax.experimental.pallas import tpu as pltpu


# ~4 MiB per input block: big enough to approach HBM roofline, small enough that
# double-buffering fits comfortably inside default scoped VMEM on v5e/v6e/v7x.
_TARGET_TILE_BYTES = 4 * 1024 * 1024


def _channel_attention_kernel(x_ref, w1_ref, w2t_ref, o_ref, sum_acc, max_acc,
                              *, s_total, ts):
    # x_ref block: (Bt, C, tS); o_ref block: (1, Bt, C)
    k = pl.program_id(1)

    @pl.when(k == 0)
    def _init():
        sum_acc[...] = jnp.zeros_like(sum_acc)
        max_acc[...] = jnp.full_like(max_acc, -jnp.inf)

    x = x_ref[...].astype(jnp.float32)                       # (Bt, C, tS)

    if s_total % ts != 0:
        # Ragged tail of the last S tile: mask padded lanes out of both reductions.
        col = lax.broadcasted_iota(jnp.int32, x.shape, dimension=2)
        valid = (col + k * ts) < s_total
        x_sum = jnp.where(valid, x, 0.0)
        x_max = jnp.where(valid, x, -jnp.inf)
    else:
        x_sum = x
        x_max = x

    sum_acc[...] += jnp.sum(x_sum, axis=-1)                  # (Bt, C)
    max_acc[...] = jnp.maximum(max_acc[...], jnp.max(x_max, axis=-1))

    @pl.when(k == pl.num_programs(1) - 1)
    def _finalize():
        bt = o_ref.shape[1]
        # Fold the 1/S mean normalization into a single scalar multiply.
        mean = sum_acc[...] * (1.0 / float(s_total))         # (Bt, C)
        # Stack avg rows and max rows: (2*Bt, C), C on the lane/contracting axis.
        p = jnp.concatenate([mean, max_acc[...]], axis=0)
        # h = p @ w1^T, contracting the C axis of both (no in-kernel transpose).
        h = lax.dot_general(p, w1_ref[...],
                            dimension_numbers=(((1,), (1,)), ((), ())),
                            preferred_element_type=jnp.float32)   # (2*Bt, hidden)
        h = jnp.maximum(h, 0.0)
        # w2 is pre-transposed to (hidden, C) -> lane-dense result (2*Bt, C).
        o = jnp.dot(h, w2t_ref[...], preferred_element_type=jnp.float32)
        out = jax.nn.sigmoid(o[:bt] + o[bt:])                # (Bt, C)
        o_ref[0] = out.astype(o_ref.dtype)


def _choose_tiles(B, C, S, itemsize):
    """Pick (Bt, tS, num_s_tiles)."""
    # S tile: full extent when it fits the budget (also covers non-128-multiple
    # S like 7*7 via the full-extent exemption); otherwise a multiple of 128.
    max_ts = max(1, _TARGET_TILE_BYTES // (C * itemsize))
    if S <= max_ts:
        ts = S
    else:
        ts = max(128, (max_ts // 128) * 128)
    num_s = pl.cdiv(S, ts)

    # Batch tile: amortize per-step overhead, but keep >=2 batch grid steps so the
    # "parallel" axis can shard across both TensorCores on v7x.
    bt_cap = max(1, _TARGET_TILE_BYTES // (C * ts * itemsize))
    if B >= 2:
        bt_cap = min(bt_cap, max(1, B // 2))
    bt = 1
    for d in range(1, min(bt_cap, B) + 1):
        if B % d == 0:
            bt = d
    return bt, ts, num_s


def channel_attention(x_nchw, w1, w2):
    """x_nchw: (B, C, H, W). w1: (C//r, C), w2: (C, C//r), both bias-free 1x1 convs.

    Returns (B, C, 1, 1) attention weights (PyTorch ChannelAttention.forward).
    """
    B, C, H, W = x_nchw.shape
    S = H * W
    hidden = w1.shape[0]

    x = x_nchw.reshape(B, C, S)
    w2t = jnp.transpose(w2)          # (hidden, C): lane-dense weight for the 2nd matmul

    bt, ts, num_s = _choose_tiles(B, C, S, x.dtype.itemsize)
    nb = B // bt

    kernel = functools.partial(_channel_attention_kernel, s_total=S, ts=ts)

    out = pl.pallas_call(
        kernel,
        out_shape=jax.ShapeDtypeStruct((nb, bt, C), x.dtype),
        grid_spec=pltpu.PrefetchScalarGridSpec(
            num_scalar_prefetch=0,
            grid=(nb, num_s),                      # reduction (S) axis last
            in_specs=[
                pl.BlockSpec((bt, C, ts), lambda b, k: (b, 0, k)),
                pl.BlockSpec((hidden, C), lambda b, k: (0, 0)),
                pl.BlockSpec((hidden, C), lambda b, k: (0, 0)),
            ],
            out_specs=pl.BlockSpec((1, bt, C), lambda b, k: (b, 0, 0)),
            scratch_shapes=[
                pltpu.VMEM((bt, C), jnp.float32),  # running sum
                pltpu.VMEM((bt, C), jnp.float32),  # running max
            ],
        ),
        compiler_params=pltpu.CompilerParams(
            dimension_semantics=("parallel", "arbitrary")),
    )(x, w1, w2t)

    return out.reshape(B, C, 1, 1)


def channel_attention_ref(x_nchw, w1, w2):
    """Pure-JAX reference matching the PyTorch forward."""
    avg = jnp.mean(x_nchw, axis=(2, 3))                       # (B, C)
    mx = jnp.max(x_nchw, axis=(2, 3))                         # (B, C)

    def fc(p):  # p: (B, C)
        h = jnp.maximum(p @ w1.T, 0.0)                        # (B, C//r)
        return h @ w2.T                                       # (B, C)

    out = jax.nn.sigmoid(fc(avg) + fc(mx))                    # (B, C)
    return out[:, :, None, None]                              # (B, C, 1, 1)


if __name__ == "__main__":
    # Module config: in_planes=128, ratio=16 -> hidden=8.
    B, C, H, W = 2, 128, 16, 16
    ratio = 16
    hidden = C // ratio

    key = jax.random.PRNGKey(0)
    kx, k1, k2 = jax.random.split(key, 3)

    x = jax.random.normal(kx, (B, C, H, W), dtype=jnp.float32)
    # Deterministic synthetic weights for the two 1x1 convs (bias=False).
    w1 = jax.random.normal(k1, (hidden, C), dtype=jnp.float32) * (1.0 / jnp.sqrt(C))
    w2 = jax.random.normal(k2, (C, hidden), dtype=jnp.float32) * (1.0 / jnp.sqrt(hidden))

    out = channel_attention(x, w1, w2)
    out = jax.block_until_ready(out)

    ref = channel_attention_ref(x, w1, w2)
    assert out.shape == (B, C, 1, 1)
    assert jnp.allclose(out, ref, atol=1e-5, rtol=1e-5), "mismatch vs reference"

    print("KERNEL_OK")
</pallas_src>

<mosaic_0001>
module attributes {stable_mosaic.version = 11 : i64} {
  func.func @_channel_attention_kernel(%arg0: i32, %arg1: i32, %arg2: memref<1x128x256xf32, #tpu.memory_space<vmem>>, %arg3: memref<8x128xf32, #tpu.memory_space<vmem>>, %arg4: memref<8x128xf32, #tpu.memory_space<vmem>>, %arg5: memref<1x1x128xf32, #tpu.memory_space<vmem>>, %arg6: memref<1x128xf32, #tpu.memory_space<vmem>>, %arg7: memref<1x128xf32, #tpu.memory_space<vmem>>) attributes {dimension_semantics = [#tpu.dimension_semantics<parallel>, #tpu.dimension_semantics<arbitrary>], iteration_bounds = array<i64: 2, 1>, scalar_prefetch = 0 : i64, scratch_operands = 2 : i64, tpu.core_type = #tpu.core_type<tc>, window_params = [{transform_indices = @transform_0, window_bounds = array<i64: 1, 128, 256>}, {pipeline_mode = #tpu.pipeline_mode<synchronous>, transform_indices = @transform_1, window_bounds = array<i64: 8, 128>}, {pipeline_mode = #tpu.pipeline_mode<synchronous>, transform_indices = @transform_2, window_bounds = array<i64: 8, 128>}, {transform_indices = @transform_3, window_bounds = array<i64: 1, 1, 128>}]} {
    %c0_i32 = arith.constant 0 : i32
    %0 = arith.cmpi eq, %arg1, %c0_i32 : i32
    %1 = arith.extui %0 : i1 to i32
    %c0_i32_0 = arith.constant 0 : i32
    %2 = arith.cmpi ne, %1, %c0_i32_0 : i32
    scf.if %2 {
      %cst_14 = arith.constant 0.000000e+00 : f32
      %15 = vector.broadcast %cst_14 : f32 to vector<1x128xf32>
      %c0_15 = arith.constant 0 : index
      %c0_16 = arith.constant 0 : index
      %16 = vector.load %arg6[%c0_15, %c0_16] : memref<1x128xf32, #tpu.memory_space<vmem>>, vector<1x128xf32>
      tpu.vector_store %arg6[%c0_15, %c0_16], %15 {strides = array<i32>} : memref<1x128xf32, #tpu.memory_space<vmem>>, vector<1x128xf32>,
      %cst_17 = arith.constant 0xFF800000 : f32
      %17 = vector.broadcast %cst_17 : f32 to vector<1x128xf32>
      %c0_18 = arith.constant 0 : index
      %c0_19 = arith.constant 0 : index
      %18 = vector.load %arg7[%c0_18, %c0_19] : memref<1x128xf32, #tpu.memory_space<vmem>>, vector<1x128xf32>
      tpu.vector_store %arg7[%c0_18, %c0_19], %17 {strides = array<i32>} : memref<1x128xf32, #tpu.memory_space<vmem>>, vector<1x128xf32>,
    } else {
    }
    %c0 = arith.constant 0 : index
    %c0_1 = arith.constant 0 : index
    %c0_2 = arith.constant 0 : index
    %3 = vector.load %arg2[%c0, %c0_1, %c0_2] : memref<1x128x256xf32, #tpu.memory_space<vmem>>, vector<1x128x256xf32>
    %c0_3 = arith.constant 0 : index
    %c0_4 = arith.constant 0 : index
    %4 = vector.load %arg6[%c0_3, %c0_4] : memref<1x128xf32, #tpu.memory_space<vmem>>, vector<1x128xf32>
    %cst = arith.constant dense<0.000000e+00> : vector<1x128xf32>
    %5 = vector.multi_reduction <add>, %3, %cst [2] : vector<1x128x256xf32> to vector<1x128xf32>
    %6 = arith.addf %4, %5 : vector<1x128xf32>
    %c0_5 = arith.constant 0 : index
    %c0_6 = arith.constant 0 : index
    %7 = vector.load %arg6[%c0_5, %c0_6] : memref<1x128xf32, #tpu.memory_space<vmem>>, vector<1x128xf32>
    tpu.vector_store %arg6[%c0_5, %c0_6], %6 {strides = array<i32>} : memref<1x128xf32, #tpu.memory_space<vmem>>, vector<1x128xf32>,
    %c0_7 = arith.constant 0 : index
    %c0_8 = arith.constant 0 : index
    %8 = vector.load %arg7[%c0_7, %c0_8] : memref<1x128xf32, #tpu.memory_space<vmem>>, vector<1x128xf32>
    %cst_9 = arith.constant dense<0xFF800000> : vector<1x128xf32>
    %9 = vector.multi_reduction <maximumf>, %3, %cst_9 [2] : vector<1x128x256xf32> to vector<1x128xf32>
    %10 = arith.maximumf %8, %9 : vector<1x128xf32>
    %c0_10 = arith.constant 0 : index
    %c0_11 = arith.constant 0 : index
    %11 = vector.load %arg7[%c0_10, %c0_11] : memref<1x128xf32, #tpu.memory_space<vmem>>, vector<1x128xf32>
    tpu.vector_store %arg7[%c0_10, %c0_11], %10 {strides = array<i32>} : memref<1x128xf32, #tpu.memory_space<vmem>>, vector<1x128xf32>,
    %c0_i32_12 = arith.constant 0 : i32
    %12 = arith.cmpi eq, %arg1, %c0_i32_12 : i32
    %13 = arith.extui %12 : i1 to i32
    %c0_i32_13 = arith.constant 0 : i32
    %14 = arith.cmpi ne, %13, %c0_i32_13 : i32
    scf.if %14 {
      %c0_14 = arith.constant 0 : index
      %c0_15 = arith.constant 0 : index
      %15 = vector.load %arg6[%c0_14, %c0_15] : memref<1x128xf32, #tpu.memory_space<vmem>>, vector<1x128xf32>
      %cst_16 = arith.constant 3.906250e-03 : f32
      %16 = vector.broadcast %cst_16 : f32 to vector<1x128xf32>
      %17 = arith.mulf %15, %16 : vector<1x128xf32>
      %c0_17 = arith.constant 0 : index
      %c0_18 = arith.constant 0 : index
      %18 = vector.load %arg7[%c0_17, %c0_18] : memref<1x128xf32, #tpu.memory_space<vmem>>, vector<1x128xf32>
      %19 = tpu.concatenate %17, %18 in 0 : vector<1x128xf32>, vector<1x128xf32> -> vector<2x128xf32>
      %c0_19 = arith.constant 0 : index
      %c0_20 = arith.constant 0 : index
      %20 = vector.load %arg3[%c0_19, %c0_20] : memref<8x128xf32, #tpu.memory_space<vmem>>, vector<8x128xf32>
      %cst_21 = arith.constant dense<0.000000e+00> : vector<2x8xf32>
      %21 = tpu.matmul %19, %20, %cst_21 {dimension_numbers = #tpu.dot_dimension_numbers<[1], [1], [0], [0], [0, 0, 1, 0], [], []>} : vector<2x128xf32>, vector<8x128xf32>, vector<2x8xf32> -> vector<2x8xf32>
      %cst_22 = arith.constant 0.000000e+00 : f32
      %22 = vector.broadcast %cst_22 : f32 to vector<2x8xf32>
      %23 = arith.maximumf %21, %22 : vector<2x8xf32>
      %c0_23 = arith.constant 0 : index
      %c0_24 = arith.constant 0 : index
      %24 = vector.load %arg4[%c0_23, %c0_24] : memref<8x128xf32, #tpu.memory_space<vmem>>, vector<8x128xf32>
      %cst_25 = arith.constant dense<0.000000e+00> : vector<2x128xf32>
      %25 = tpu.matmul %23, %24, %cst_25 {dimension_numbers = #tpu.dot_dimension_numbers<[1], [0], [0], [1], [0, 0, 1, 1], [], []>} : vector<2x8xf32>, vector<8x128xf32>, vector<2x128xf32> -> vector<2x128xf32>
      %26 = vector.extract_strided_slice %25 {offsets = [0, 0], sizes = [1, 128], strides = [1, 1]} : vector<2x128xf32> to vector<1x128xf32>
      %27 = vector.extract_strided_slice %25 {offsets = [1, 0], sizes = [1, 128], strides = [1, 1]} : vector<2x128xf32> to vector<1x128xf32>
      %28 = arith.addf %26, %27 : vector<1x128xf32>
      %29 = arith.negf %28 : vector<1x128xf32>
      %30 = math.exp %29 : vector<1x128xf32>
      %cst_26 = arith.constant 1.000000e+00 : f32
      %31 = vector.broadcast %cst_26 : f32 to vector<1x128xf32>
      %32 = arith.addf %31, %30 : vector<1x128xf32>
      %33 = arith.divf %31, %32 : vector<1x128xf32>
      %c0_27 = arith.constant 0 : index
      %c0_28 = arith.constant 0 : index
      %c0_29 = arith.constant 0 : index
      %34 = vector.load %arg5[%c0_27, %c0_28, %c0_29] : memref<1x1x128xf32, #tpu.memory_space<vmem>>, vector<1x1x128xf32>
      %35 = vector.shape_cast %34 : vector<1x1x128xf32> to vector<1x128xf32>
      %36 = vector.shape_cast %33 : vector<1x128xf32> to vector<1x1x128xf32>
      tpu.vector_store %arg5[%c0_27, %c0_28, %c0_29], %36 {strides = array<i32>} : memref<1x1x128xf32, #tpu.memory_space<vmem>>, vector<1x1x128xf32>,
    } else {
    }
    return
  }
  func.func @transform_0(%arg0: i32, %arg1: i32) -> (i32, i32, i32) {
    %c0_i32 = arith.constant 0 : i32
    %c0_i32_0 = arith.constant 0 : i32
    return %arg0, %c0_i32, %arg1 : i32, i32, i32
  }
  func.func @transform_1(%arg0: i32, %arg1: i32) -> (i32, i32) {
    %c0_i32 = arith.constant 0 : i32
    %c0_i32_0 = arith.constant 0 : i32
    %c0_i32_1 = arith.constant 0 : i32
    return %c0_i32, %c0_i32_0 : i32, i32
  }
  func.func @transform_2(%arg0: i32, %arg1: i32) -> (i32, i32) {
    %c0_i32 = arith.constant 0 : i32
    %c0_i32_0 = arith.constant 0 : i32
    %c0_i32_1 = arith.constant 0 : i32
    return %c0_i32, %c0_i32_0 : i32, i32
  }
  func.func @transform_3(%arg0: i32, %arg1: i32) -> (i32, i32, i32) {
    %c0_i32 = arith.constant 0 : i32
    %c0_i32_0 = arith.constant 0 : i32
    %c0_i32_1 = arith.constant 0 : i32
    return %arg0, %c0_i32, %c0_i32_0 : i32, i32, i32
  }
}

</mosaic_0001>

<bundles_post_ra>
// kernel: tpu_custom_call.1
= control target key start
LH: loop header
LB: loop body
LE: loop exit
PB: predicated region body
PF: predicated region fallthrough
CT: control target
= control target key end

     0   :  { %8 = vsyncpa [#allocation5], 0  ;;  %s4835_s0 = inlined_call_operand.hbm [shape: f32[2,128,256], index: 0, kind: input, shape index: {}]   ;;  %s4836_s1 = inlined_call_operand.hbm [shape: f32[8,128], index: 1, kind: input, shape index: {}]   ;;  %s4837_s2 = inlined_call_operand.hbm [shape: f32[8,128], index: 2, kind: input, shape index: {}]   ;;  %s4838_s3 = inlined_call_operand.hbm [shape: f32[2,1,128], index: 3, kind: output, shape index: {}]  }
   0x1   :  { %10 = vsyncpa [#allocation5 + $0x1], 0 }
   0x2   :  { %11 = vsyncpa [#allocation8], 0 }
   0x3   :  { %12 = vsyncpa [#allocation6], 0 }
   0x4   :  { %14 = vsyncpa [#allocation6 + $0x1], 0  ;;  %s3926_s12 = smov 0   ;;  %s3928_s13 = smov 0  }
   0x5   :  { %s3930_s14 = smov 0   ;;  %s3932_s15 = smov 0  }
   0x6   :  { %s3934_s16 = smov 0   ;;  %s3936_s17 = smov 0  }
   0x7 LB: > { %s3591_s18 = sadd.s32 4294967295, %s3893_s17   ;;  %s3592_s19 = sadd.s32 4294967294, %s3893_s17   ;;  %s3893_s17 = sphi %s3936_s17, %s20_s17   ;;  %s3889_s16 = sphi %s3934_s16, %s4864_s16   ;;  %s3885_s15 = sphi %s3932_s15, %s4863_s15   ;;  %s3881_s14 = sphi %s3930_s14, %s4862_s14   ;;  %s3877_s13 = sphi %s3928_s13, %s4861_s13   ;;  %s3873_s12 = sphi %s3926_s12, %s4860_s12  }
   0x8   : > { %s41_s20 = sadd.s32 1, %s3881_s14  ;;  %p48_p0 = scmp.ne.s32.totalorder %s3881_s14, %s3877_s13 }
   0x9   : > { %p49_p1 = scmp.eq.s32.totalorder %s3893_s17, 0  ;;  %p54_p2 = scmp.ne.s32.totalorder %s3877_s13, %s3873_s12 }
   0xa   : > { %p3964_p3 = scmp.eq.s32.totalorder %s3591_s18, 0  ;;  %p120_p4 = scmp.eq.s32.totalorder %s3591_s18, 1 }
   0xb   : > { %p3968_p5 = por %p49_p1, %p48_p0  ;;  %p126_p6 = scmp.eq.s32.totalorder %s3592_s19, 1 }
   0xc   : > { %s4845_s21 = scalar_select %p3964_p3, 1, 0 }
   0xd   : > { %p3974_p7 = por %p3964_p3, %p54_p2  ;;  %p3978_p8 = por %p120_p4, %p48_p0 }
   0xe   : > { %p3982_p9 = por %p126_p6, %p54_p2  ;;  %p3593_p10 = scmp.ge.s32.totalorder %s3893_s17, 1 }
   0xf   : > { %s4847_s23 = scalar_select %p3974_p7, 1, 0 }
  0x10   : > { %s4848_s24 = scalar_select %p3978_p8, 1, 0 }
  0x11   : > { %s4849_s25 = scalar_select %p3982_p9, 1, 0 }
  0x12   : > { %p133_p11 = scmp.lt.s32.totalorder %s3893_s17, 3  ;;  %s3895_s27 = smov [#allocation7]  }
  0x13   : > { %s146_s28 = sshll.u32 %s3895_s27, 4  ;;  %p3654_p1 = scmp.lt.s32.totalorder %s3893_s17, 2  ;;  %s147_s28 = int_to_ptr.vmem [resolvable:$true] %s146_s28 }
  0x14   : > { %p3989_p13 = pnand %p3593_p10, %p133_p11  ;;  %s3896_s30 = smov [#allocation9]  }
  0x15   : > { %p3998_p4 = pnand %p3654_p1, %p3968_p5  ;;  %s157_s4 = sshll.u32 %s3896_s30, 4  ;;  %s4008_s4 = int_to_ptr.vmem [resolvable:$true] %s157_s4 }
  0x16   : > { %s4850_s26 = scalar_select %p3989_p13, 1, 0 }
  0x17   : > { %p3637_p0 = pneg %p3989_p13  ;;  %s3721_s8 = scalar_lea.hbm %s4836_s1, 128 }
  0x18   : > { %s4851_s29 = scalar_select %p3998_p4, 1, 0 }
  0x19   : > { %p4004_p2 = pnand %p3637_p0, %p3964_p3  ;;  %p3722_p5 = scmp.ne.s32.totalorder %s4836_s1, %s3721_s8 }
  0x1a   : > { %p3728_p1 = scmp.lt.u32.totalorder %s3721_s8, %s4836_s1 }
  0x1b   : > { %p3723_p6 = pneg %p4004_p2 }
  0x1d   : > { %p3724_p10 = pnand %p3723_p6, %p3722_p5 }
  0x1f   : > { %p3725_p11 = pneg %p3724_p10 }
  0x21   : > { %p3730_p0 = pnand %p3728_p1, %p3725_p11 }
  0x23   : > { %3733 = shalt.err (!%p3730_p0)
}
  0x24   : > { %s3734_s19 = scalar_lea.vmem %s147_s28, 128  ;;  %p3742_p3 = scmp.lt.s32.totalorder %s147_s28, %s147_s28 }
  0x25   : > { %p3735_p12 = scmp.ne.s32.totalorder %s147_s28, %s3734_s19  ;;  %p3743_p7 = scmp.lt.s32.totalorder %s3734_s19, %s3734_s19 }
  0x27   : > { %p3737_p9 = pnand %p3735_p12, %p3723_p6  ;;  %p3744_p13 = por %p3743_p7, %p3742_p3 }
  0x29   : > { %p3738_p8 = pneg %p3737_p9 }
  0x2b   : > { %p3745_p4 = pnand %p3744_p13, %p3738_p8 }
  0x2d   : > { %3748 = shalt.err (!%p3745_p4)
}
  0x2e   : > { %3640 = dma.hbm_to_vmem [thread:$0]  (!%p4004_p2), %s4836_s1, 128, %s147_s28, [#allocation8]  }
  0x2f   : > { %s3749_s7 = scalar_lea.hbm %s4837_s2, 128 }
  0x30   : > { %p3750_p9 = scmp.ne.s32.totalorder %s4837_s2, %s3749_s7  ;;  %p3756_p8 = scmp.lt.u32.totalorder %s3749_s7, %s4837_s2 }
  0x32   : > { %p3752_p3 = pnand %p3750_p9, %p3723_p6 }
  0x34   : > { %p3753_p7 = pneg %p3752_p3 }
  0x36   : > { %p3758_p12 = pnand %p3756_p8, %p3753_p7 }
  0x38   : > { %3761 = shalt.err (!%p3758_p12)
}
  0x39   : > { %s3762_s28 = scalar_lea.vmem %s4008_s4, 128  ;;  %p3770_p10 = scmp.lt.s32.totalorder %s4008_s4, %s4008_s4 }
  0x3a   : > { %p3763_p13 = scmp.ne.s32.totalorder %s4008_s4, %s3762_s28  ;;  %p3771_p11 = scmp.lt.s32.totalorder %s3762_s28, %s3762_s28 }
  0x3c   : > { %p3765_p4 = pnand %p3763_p13, %p3723_p6  ;;  %p3772_p1 = por %p3771_p11, %p3770_p10 }
  0x3e   : > { %p3766_p5 = pneg %p3765_p4 }
  0x40   : > { %p3773_p0 = pnand %p3772_p1, %p3766_p5 }
  0x42   : > { %3776 = shalt.err (!%p3773_p0)
}
  0x43   : > { %3643 = dma.hbm_to_vmem [thread:$0]  (!%p4004_p2), %s4837_s2, 128, %s4008_s4, [#allocation8]  }
  0x44   : > { %s32_s22 = sadd.s32 1, %s3889_s16  ;;  %s168_s27 = sand.u32 1, %s3881_s14  }
  0x45   : > { %p34_p6 = scmp.ge.s32.totalorder %s32_s22, 2  ;;  %s3597_s30 = sshll.u32 %s168_s27, 8 }
  0x46   : > { %s3610_s6 = sshll.u32 %s3889_s16, 12  ;;  %s172_s4 = scalar_lea.vmem [#allocation4], %s3597_s30 }
  0x47   : > { %s4866_s22 = smov (%p34_p6, %s32_s22), 0  ;;  %s4065_s8 = scalar_lea.hbm %s4835_s0, %s3610_s6 }
  0x48   : > { %s36_s9 = ssub.s32 %s3889_s16, %s4866_s22  ;;  %s181_s10 = sshll.u32 %s172_s4, 4  ;;  %s4069_s10 = int_to_ptr.vmem [resolvable:$true] %s181_s10 }
  0x49   : > { %p39_p2 = scmp.eq.s32.totalorder %s36_s9, 0  ;;  %s4076_s28 = scalar_lea.sflag [#allocation5], %s168_s27 }
  0x4a   : > { %s3777_s18 = scalar_lea.hbm %s4065_s8, 4096  ;;  %p4853_p3 = scmp.ne.s32.totalorder %s4851_s29, 0 }
  0x4b   : > { %s4074_s11 = scalar_select %p39_p2, %s3881_s14, %s41_s20  }
  0x4c   : > { %p3778_p9 = scmp.ne.s32.totalorder %s4065_s8, %s3777_s18  ;;  %p3779_p7 = pneg %p4853_p3 }
  0x4d   : > { %s3782_s30 = scalar_lea.hbm %s4835_s0, 8192  ;;  %p3783_p13 = scmp.lt.u32.totalorder %s4065_s8, %s4835_s0 }
  0x4e   : > { %p3780_p8 = pnand %p3779_p7, %p3778_p9  ;;  %p3784_p4 = scmp.lt.u32.totalorder %s3782_s30, %s3777_s18 }
  0x4f   : > { %p3786_p10 = scmp.lt.u32.totalorder %s3777_s18, %s4065_s8 }
  0x50   : > { %p3781_p12 = pneg %p3780_p8  ;;  %p3785_p5 = por %p3784_p4, %p3783_p13 }
  0x52   : > { %p3787_p11 = por %p3786_p10, %p3785_p5 }
  0x54   : > { %p3788_p1 = pnand %p3787_p11, %p3781_p12 }
  0x56   : > { %3791 = shalt.err (!%p3788_p1)
}
  0x57   : > { %s3792_s20 = scalar_lea.vmem %s4069_s10, 4096  ;;  %s3897_s27 = smov [#allocation4]  }
  0x58   : > { %p3793_p0 = scmp.ne.s32.totalorder %s4069_s10, %s3792_s20  ;;  %s3797_s9 = sshll.u32 %s3897_s27, 4  ;;  %s3798_s9 = int_to_ptr.vmem [resolvable:$false] %s3797_s9 }
  0x59   : > { %s3799_s4 = scalar_lea.vmem %s3798_s9, 8192  ;;  %p3800_p9 = scmp.lt.s32.totalorder %s4069_s10, %s3798_s9 }
  0x5a   : > { %p3795_p6 = pnand %p3793_p0, %p3779_p7  ;;  %p3801_p8 = scmp.lt.s32.totalorder %s3799_s4, %s3792_s20 }
  0x5c   : > { %p3796_p2 = pneg %p3795_p6  ;;  %p3802_p13 = por %p3801_p8, %p3800_p9 }
  0x5e   : > { %p3803_p4 = pnand %p3802_p13, %p3796_p2 }
  0x60   : > { %3806 = shalt.err (!%p3803_p4)
}
  0x61   : > { %s3898_s18 = smov 256   ;;  %s3899_s19 = smov 16  }
  0x62   : > { %3647 = dma.hbm_to_vmem [thread:$0]  (!%p4853_p3), %s4065_s8, 4096, %s4069_s10, %s4076_s28, %s3898_s18, %s3898_s18, %s3899_s19  }
  0x63   : > { %p4854_p7 = scmp.ne.s32.totalorder %s4850_s26, 0 }
  0x64   : > { %s4107_s6 = sand.u32 (!%p4854_p7), 1, %s3877_s13   ;;  %p4855_p12 = scmp.ne.s32.totalorder (!%p4854_p7), %s4847_s23, 0 }
  0x65   : > { %193 = sbr.rel (%p4854_p7) target bundleno = 1049 (0x419), region = 32  ;;  %s3601_s30 = sshll.u32 (!%p4854_p7), %s4107_s6, 8 }
  0x66   : > { %s196_s5 = scalar_lea.sflag (!%p4854_p7), [#allocation5], %s4107_s6  ;;  %s4111_s7 = scalar_lea.vmem (!%p4854_p7), [#allocation4], %s3601_s30 }
  0x6c   : > { %3860 = dma.done.wait (%p4855_p12), %s196_s5, 4096  }
  0x6d   : > { %3862 = vsyncadd (%p4855_p12), %s196_s5, 4294963200  ;;  %p4856_p3 = scmp.ne.s32.totalorder %s4845_s21, 0 }
  0x6f   : > { %3864 = dma.done.wait (%p4856_p3), [#allocation8], 256  }
  0x70   : > { %3866 = vsyncadd (%p4856_p3), [#allocation8], 4294967040  ;;  %v240_v0 = vld [vmem:[%s4111_s7 + $0x20] sm:$0xff]  ;;  %v241_v1 = vld [vmem:[%s4111_s7 + $0x28] sm:$0xff]  ;;  %v3900_v30 = vmov 0   ;;  %vm3904_vm0 = vmmov 0  }
  0x71   : > { %v236_v2 = vld [vmem:[%s4111_s7] sm:$0xff]  ;;  %v275_v3 = vadd.f32 %v241_v1, %v240_v0  ;;  %v237_v4 = vld [vmem:[%s4111_s7 + $0x8] sm:$0xff]  ;;  %v242_v5 = vld [vmem:[%s4111_s7 + $0x30] sm:$0xff]  ;;  %v1812_v14 = vmax.f32 %v240_v0, %v241_v1  ;;  %3715 = vset.pattern.permute.xlu0 %v3900_v30  ;;  %3716 = vset.pattern.permute.xlu1 %v3900_v30  ;;  %v333_v1 = vlaneseq  ;;  %vm1688_vm1 = vcmask 130112   ;;  %s3607_s21 = sshll.u32 %s3885_s15, 4  ;;  %s228_s23 = scalar_lea.vmem [#allocation10], %s4107_s6 }
  0x72   : > { %v243_v6 = vld [vmem:[%s4111_s7 + $0x38] sm:$0xff]  ;;  %v269_v7 = vadd.f32 %v237_v4, %v236_v2  ;;  %v238_v8 = vld [vmem:[%s4111_s7 + $0x10] sm:$0xff]  ;;  %v1806_v13 = vmax.f32 %v236_v2, %v237_v4  ;;  %v244_v15 = vld [vmem:[%s4111_s7 + $0x40] sm:$0xff]  ;;  %v3901_v2 = vmov 1966171168   ;;  %vm1695_vm2 = vcmask 195712   ;;  %s4786_s10 = scalar_lea.hbm %s4838_s3, %s3607_s21 }
  0x73   : > { %v239_v9 = vld [vmem:[%s4111_s7 + $0x18] sm:$0xff]  ;;  %276 = vadd.xlane.f32.xlu1 %v275_v3  ;;  %v278_v10 = vadd.f32 %v243_v6, %v242_v5  ;;  %v245_v16 = vld [vmem:[%s4111_s7 + $0x48] sm:$0xff]  ;;  %v1815_v18 = vmax.f32 %v242_v5, %v243_v6  ;;  %v246_v19 = vld [vmem:[%s4111_s7 + $0x50] sm:$0xff]  ;;  %v850_v3 = vunpack.c.l.s4 %v3901_v2  ;;  %v4154_v4 = vshrl.u32 %v333_v1, 7  ;;  %s3495_s26 = sshll.u32 %s228_s23, 4  ;;  %s3483_s28 = scalar_lea.sflag [#allocation6], %s4107_s6  ;;  %s4788_s26 = int_to_ptr.vmem [resolvable:$true] %s3495_s26 }
  0x74   : > { %270 = vadd.xlane.f32.xlu0 %v269_v7  ;;  %v272_v11 = vadd.f32 %v239_v9, %v238_v8  ;;  %v1809_v12 = vmax.f32 %v238_v8, %v239_v9  ;;  %v281_v17 = vadd.f32 %v245_v16, %v244_v15  ;;  %v247_v20 = vld [vmem:[%s4111_s7 + $0x58] sm:$0xff]  ;;  %v1818_v22 = vmax.f32 %v244_v15, %v245_v16  ;;  %v248_v23 = vld [vmem:[%s4111_s7 + $0x60] sm:$0xff]  ;;  %v249_v24 = vld [vmem:[%s4111_s7 + $0x68] sm:$0xff]  ;;  %s3807_s20 = scalar_lea.vmem %s4788_s26, 16  ;;  %p4857_p10 = scmp.ne.s32.totalorder %s4848_s24, 0 }
  0x75   : > { %v284_v21 = vadd.f32 %v247_v20, %v246_v19  ;;  %v287_v25 = vadd.f32 %v249_v24, %v248_v23  ;;  %v1821_v26 = vmax.f32 %v246_v19, %v247_v20  ;;  %v250_v27 = vld [vmem:[%s4111_s7 + $0x70] sm:$0xff]  ;;  %v251_v28 = vld [vmem:[%s4111_s7 + $0x78] sm:$0xff]  ;;  %v1824_v31 = vmax.f32 %v248_v23, %v249_v24  ;;  %v252_v32 = vld [vmem:[%s4111_s7 + $0x80] sm:$0xff]  ;;  %p3808_p5 = scmp.ne.s32.totalorder %s4788_s26, %s3807_s20  ;;  %s3905_s15 = smov [#allocation10]  }
  0x76   : > { %v290_v29 = vadd.f32 %v251_v28, %v250_v27  ;;  %v253_v33 = vld [vmem:[%s4111_s7 + $0x88] sm:$0xff]  ;;  %v1827_v35 = vmax.f32 %v250_v27, %v251_v28  ;;  %v254_v36 = vld [vmem:[%s4111_s7 + $0x90] sm:$0xff]  ;;  %v255_v37 = vld [vmem:[%s4111_s7 + $0x98] sm:$0xff]  ;;  %v851_v5 = vunpack.c.0.s8 %v850_v3  ;;  %v4157_v6 = vsub.s32 0, %v4154_v4  ;;  %s3811_s27 = sshll.u32 %s3905_s15, 4  ;;  %s3812_s27 = int_to_ptr.vmem [resolvable:$false] %s3811_s27 }
  0x77   : > { %279 = vadd.xlane.f32.xlu1 %v278_v10  ;;  %v293_v34 = vadd.f32 %v253_v33, %v252_v32  ;;  %v296_v38 = vadd.f32 %v255_v37, %v254_v36  ;;  %v1830_v39 = vmax.f32 %v252_v32, %v253_v33  ;;  %v256_v40 = vld [vmem:[%s4111_s7 + $0xa0] sm:$0xff]  ;;  %v257_v41 = vld [vmem:[%s4111_s7 + $0xa8] sm:$0xff]  ;;  %v1833_v43 = vmax.f32 %v254_v36, %v255_v37  ;;  %v258_v44 = vld [vmem:[%s4111_s7 + $0xb0] sm:$0xff]  ;;  %p3809_p11 = pnand %p3808_p5, %p4857_p10  ;;  %s3813_s9 = scalar_lea.vmem %s3812_s27, 32 }
  0x78   : > { %273 = vadd.xlane.f32.xlu0 %v272_v11  ;;  %v299_v42 = vadd.f32 %v257_v41, %v256_v40  ;;  %v259_v45 = vld [vmem:[%s4111_s7 + $0xb8] sm:$0xff]  ;;  %v1836_v47 = vmax.f32 %v256_v40, %v257_v41  ;;  %v260_v48 = vld [vmem:[%s4111_s7 + $0xc0] sm:$0xff]  ;;  %v261_v49 = vld [vmem:[%s4111_s7 + $0xc8] sm:$0xff]  ;;  %v4160_v7 = vsub.s32 1, %v4154_v4  ;;  %v4163_v8 = vsub.s32 2, %v4154_v4  ;;  %p3814_p0 = scmp.lt.s32.totalorder %s4788_s26, %s3812_s27  ;;  %p3815_p6 = scmp.lt.s32.totalorder %s3813_s9, %s3807_s20 }
  0x79   : > { %v302_v46 = vadd.f32 %v259_v45, %v258_v44  ;;  %v305_v50 = vadd.f32 %v261_v49, %v260_v48  ;;  %v1839_v51 = vmax.f32 %v258_v44, %v259_v45  ;;  %v262_v52 = vld [vmem:[%s4111_s7 + $0xd0] sm:$0xff]  ;;  %v263_v53 = vld [vmem:[%s4111_s7 + $0xd8] sm:$0xff]  ;;  %v264_v55 = vld [vmem:[%s4111_s7 + $0xe0] sm:$0xff]  ;;  %v1842_v57 = vmax.f32 %v260_v48, %v261_v49  ;;  %p3810_p1 = pneg %p3809_p11 }
  0x7a   : > { %v308_v54 = vadd.f32 %v263_v53, %v262_v52  ;;  %v265_v56 = vld [vmem:[%s4111_s7 + $0xe8] sm:$0xff]  ;;  %v1845_v59 = vmax.f32 %v262_v52, %v263_v53  ;;  %v266_v60 = vld [vmem:[%s4111_s7 + $0xf0] sm:$0xff]  ;;  %v267_v61 = vld [vmem:[%s4111_s7 + $0xf8] sm:$0xff]  ;;  %v4166_v9 = vsub.s32 3, %v4154_v4  ;;  %v4169_v10 = vsub.s32 4, %v4154_v4  ;;  %p3816_p2 = por %p3815_p6, %p3814_p0 }
  0x7b   : > { %1810 = vmax.xlane.f32.xlu1 %v1809_v12  ;;  %v311_v58 = vadd.f32 %v265_v56, %v264_v55  ;;  %v314_v62 = vadd.f32 %v267_v61, %v266_v60  ;;  %v1851_v63 = vmax.f32 %v266_v60, %v267_v61  ;;  %v1848_v0 = vmax.f32 %v264_v55, %v265_v56 }
  0x7c   : > { %1807 = vmax.xlane.f32.xlu0 %v1806_v13  ;;  %v4172_v11 = vsub.s32 5, %v4154_v4  ;;  %v4175_v12 = vsub.s32 6, %v4154_v4  ;;  %v4178_v13 = vsub.s32 7, %v4154_v4  ;;  %v4181_v15 = vsub.s32 %v851_v5, %v4154_v4  ;;  %p3817_p9 = pnand %p3816_p2, %p3810_p1 }
  0x7d   : > { %vm1702_vm3 = vcmask 261312   ;;  %vm1709_vm4 = vcmask 326912   ;;  %vm1716_vm5 = vcmask 392512   ;;  %vm1723_vm6 = vcmask 458112  }
  0x7e   : > { %vm1730_vm7 = vcmask 523712   ;;  %vm1737_vm8 = vcmask 589312   ;;  %vm1744_vm9 = vcmask 654912   ;;  %vm1751_vm10 = vcmask 720512  }
  0x7f   : > { %1813 = vmax.xlane.f32.xlu1 %v1812_v14  ;;  %vm1758_vm11 = vcmask 786112   ;;  %vm1765_vm12 = vcmask 851712   ;;  %vm1779_vm13 = vcmask 982912   ;;  %vm1772_vm14 = vcmask 917312  }
  0x80   : > { %282 = vadd.xlane.f32.xlu0 %v281_v17  ;;  %vm1786_vm15 = vcmask 1048512  }
  0x83   : > { %1816 = vmax.xlane.f32.xlu1 %v1815_v18 }
  0x84   : > { %285 = vadd.xlane.f32.xlu0 %v284_v21 }
  0x87   : > { %1819 = vmax.xlane.f32.xlu1 %v1818_v22 }
  0x88   : > { %288 = vadd.xlane.f32.xlu0 %v287_v25 }
  0x8b   : > { %1822 = vmax.xlane.f32.xlu1 %v1821_v26 }
  0x8c   : > { %291 = vadd.xlane.f32.xlu0 %v290_v29 }
  0x8f   : > { %1825 = vmax.xlane.f32.xlu1 %v1824_v31 }
  0x90   : > { %294 = vadd.xlane.f32.xlu0 %v293_v34 }
  0x93   : > { %1828 = vmax.xlane.f32.xlu1 %v1827_v35 }
  0x94   : > { %297 = vadd.xlane.f32.xlu0 %v296_v38 }
  0x97   : > { %1831 = vmax.xlane.f32.xlu1 %v1830_v39 }
  0x98   : > { %300 = vadd.xlane.f32.xlu0 %v299_v42 }
  0x9b   : > { %1834 = vmax.xlane.f32.xlu1 %v1833_v43 }
  0x9c   : > { %303 = vadd.xlane.f32.xlu0 %v302_v46 }
  0x9f   : > { %1837 = vmax.xlane.f32.xlu1 %v1836_v47 }
  0xa0   : > { %306 = vadd.xlane.f32.xlu0 %v305_v50 }
  0xa3   : > { %1840 = vmax.xlane.f32.xlu1 %v1839_v51 }
  0xa4   : > { %309 = vadd.xlane.f32.xlu0 %v308_v54 }
  0xa7   : > { %1843 = vmax.xlane.f32.xlu1 %v1842_v57 }
  0xa8   : > { %312 = vadd.xlane.f32.xlu0 %v311_v58 }
  0xab   : > { %1846 = vmax.xlane.f32.xlu1 %v1845_v59 }
  0xac   : > { %315 = vadd.xlane.f32.xlu0 %v314_v62 }
  0xaf   : > { %1852 = vmax.xlane.f32.xlu1 %v1851_v63 }
  0xb0   : > { %1849 = vmax.xlane.f32.xlu0 %v1848_v0 }
 0x100   : > { %v277_v14 = vpop.xlane.xlu1 %276 }
 0x101   : > { %v271_v16 = vpop.xlane.xlu0 %270  ;;  %v400_v17 = vrot.slane %v277_v14, %v4157_v6  ;;  %v404_v18 = vrot.slane %v277_v14, %v4160_v7  ;;  %v408_v19 = vrot.slane %v277_v14, %v4163_v8  ;;  %v412_v20 = vrot.slane %v277_v14, %v4166_v9 }
 0x102   : > { %v336_v21 = vrot.slane %v271_v16, %v4157_v6  ;;  %v340_v22 = vrot.slane %v271_v16, %v4160_v7  ;;  %v344_v23 = vrot.slane %v271_v16, %v4163_v8  ;;  %v348_v24 = vrot.slane %v271_v16, %v4166_v9 }
 0x103   : > { %v352_v25 = vrot.slane %v271_v16, %v4169_v10  ;;  %v356_v26 = vrot.slane %v271_v16, %v4172_v11  ;;  %v360_v27 = vrot.slane %v271_v16, %v4175_v12  ;;  %v364_v28 = vrot.slane %v271_v16, %v4178_v13 }
 0x104   : > { %v4195_v29 = vpop.xlane.xlu1 %279  ;;  %v845_v30 = vcombine.low %v336_v21, %v340_v22  ;;  %v846_v31 = vcombine.low %v344_v23, %v348_v24  ;;  %v416_v32 = vrot.slane %v277_v14, %v4169_v10  ;;  %v420_v33 = vrot.slane %v277_v14, %v4172_v11 }
 0x105   : > { %v274_v34 = vpop.xlane.xlu0 %273  ;;  %v847_v35 = vcombine.low %v352_v25, %v356_v26  ;;  %v848_v36 = vcombine.low %v360_v27, %v364_v28  ;;  %v424_v37 = vrot.slane %v277_v14, %v4175_v12  ;;  %v428_v38 = vrot.slane %v277_v14, %v4178_v13 }
 0x106   : > { %v855_v39 = vrot.slane %v845_v30, %v4181_v15  ;;  %v862_v40 = vrot.slane %v846_v31, %v4181_v15  ;;  %v368_v41 = vrot.slane %v274_v34, %v4157_v6  ;;  %v372_v42 = vrot.slane %v274_v34, %v4160_v7 }
 0x107   : > { %v869_v43 = vrot.slane %v847_v35, %v4181_v15  ;;  %v876_v44 = vrot.slane %v848_v36, %v4181_v15  ;;  %v376_v45 = vrot.slane %v274_v34, %v4163_v8  ;;  %v380_v46 = vrot.slane %v274_v34, %v4166_v9 }
 0x108   : > { %v4209_v47 = vpop.xlane.xlu1 %1810  ;;  %v877_v48 = vcombine.low %v855_v39, %v862_v40  ;;  %v384_v49 = vrot.slane %v274_v34, %v4169_v10  ;;  %v388_v50 = vrot.slane %v274_v34, %v4172_v11  ;;  %v392_v51 = vrot.slane %v274_v34, %v4175_v12 }
 0x109   : > { %v878_v52 = vcombine.low %v869_v43, %v876_v44  ;;  %v396_v53 = vrot.slane %v274_v34, %v4178_v13  ;;  %v894_v54 = vcombine.low %v368_v41, %v372_v42  ;;  %v895_v55 = vcombine.low %v376_v45, %v380_v46  ;;  %v1808_v46 = vpop.xlane.xlu0 %1807 }
 0x10a   : > { %v885_v56 = vrot.slane %v877_v48, %v4181_v15  ;;  %v896_v57 = vcombine.low %v384_v49, %v388_v50  ;;  %v943_v58 = vcombine.low %v400_v17, %v404_v18  ;;  %v944_v59 = vcombine.low %v408_v19, %v412_v20 }
 0x10b   : > { %v892_v60 = vrot.slane %v878_v52, %v4181_v15  ;;  %v897_v61 = vcombine.low %v392_v51, %v396_v53  ;;  %v904_v62 = vrot.slane %v894_v54, %v4181_v15  ;;  %v911_v63 = vrot.slane %v895_v55, %v4181_v15 }
 0x10c   : > { %v4219_v0 = vpop.xlane.xlu1 %1813  ;;  %v918_v2 = vrot.slane %v896_v57, %v4181_v15  ;;  %v945_v3 = vcombine.low %v416_v32, %v420_v33  ;;  %v946_v5 = vcombine.low %v424_v37, %v428_v38  ;;  %v953_v14 = vrot.slane %v943_v58, %v4181_v15 }
 0x10d   : > { %v893_v16 = vcombine.low %v885_v56, %v892_v60  ;;  %v925_v21 = vrot.slane %v897_v61, %v4181_v15  ;;  %v926_v17 = vcombine.low %v904_v62, %v911_v63  ;;  %v960_v18 = vrot.slane %v944_v59, %v4181_v15 }
 0x10e   : > { %v967_v19 = vrot.slane %v945_v3, %v4181_v15  ;;  %v974_v20 = vrot.slane %v946_v5, %v4181_v15  ;;  %v432_v22 = vrot.slane %v4195_v29, %v4157_v6  ;;  %v436_v23 = vrot.slane %v4195_v29, %v4160_v7 }
 0x10f   : > { %1630 = vperm.xlu0 %3715, %v893_v16   ;;  %v927_v24 = vcombine.low %v918_v2, %v925_v21  ;;  %v934_v25 = vrot.slane %v926_v17, %v4181_v15  ;;  %v975_v26 = vcombine.low %v953_v14, %v960_v18  ;;  %v440_v27 = vrot.slane %v4195_v29, %v4163_v8 }
 0x110   : > { %v1817_v28 = vpop.xlane.xlu1 %1816  ;;  %v976_v30 = vcombine.low %v967_v19, %v974_v20  ;;  %v444_v31 = vrot.slane %v4195_v29, %v4166_v9  ;;  %v448_v32 = vrot.slane %v4195_v29, %v4169_v10  ;;  %v452_v33 = vrot.slane %v4195_v29, %v4172_v11 }
 0x111   : > { %v941_v34 = vrot.slane %v927_v24, %v4181_v15  ;;  %v983_v35 = vrot.slane %v975_v26, %v4181_v15  ;;  %v456_v36 = vrot.slane %v4195_v29, %v4175_v12  ;;  %v460_v37 = vrot.slane %v4195_v29, %v4178_v13 }
 0x112   : > { %v990_v38 = vrot.slane %v976_v30, %v4181_v15  ;;  %v992_v39 = vcombine.low %v432_v22, %v436_v23  ;;  %v993_v40 = vcombine.low %v440_v27, %v444_v31  ;;  %v994_v41 = vcombine.low %v448_v32, %v452_v33 }
 0x113   : > { %v942_v42 = vcombine.low %v934_v25, %v941_v34  ;;  %v995_v43 = vcombine.low %v456_v36, %v460_v37  ;;  %v1969_v44 = vrot.slane %v1817_v28, %v4157_v6  ;;  %v1973_v45 = vrot.slane %v1817_v28, %v4160_v7 }
 0x114   : > { %v991_v48 = vcombine.low %v983_v35, %v990_v38  ;;  %v1002_v49 = vrot.slane %v992_v39, %v4181_v15  ;;  %v1009_v50 = vrot.slane %v993_v40, %v4181_v15  ;;  %v1016_v51 = vrot.slane %v994_v41, %v4181_v15  ;;  %v1820_v18 = vpop.xlane.xlu1 %1819 }
 0x115   : > { %1633 = vperm.xlu1 %3716, %v942_v42   ;;  %v1023_v29 = vrot.slane %v995_v43, %v4181_v15  ;;  %v1977_v52 = vrot.slane %v1817_v28, %v4163_v8  ;;  %v1981_v53 = vrot.slane %v1817_v28, %v4166_v9  ;;  %v1985_v54 = vrot.slane %v1817_v28, %v4169_v10 }
 0x116   : > { %v1024_v55 = vcombine.low %v1002_v49, %v1009_v50  ;;  %v1989_v56 = vrot.slane %v1817_v28, %v4172_v11  ;;  %v1993_v57 = vrot.slane %v1817_v28, %v4175_v12  ;;  %v1997_v58 = vrot.slane %v1817_v28, %v4178_v13 }
 0x117   : > { %v1025_v59 = vcombine.low %v1016_v51, %v1023_v29  ;;  %v2529_v60 = vcombine.low %v1969_v44, %v1973_v45  ;;  %v2530_v61 = vcombine.low %v1977_v52, %v1981_v53  ;;  %v1873_v62 = vrot.slane %v1808_v46, %v4157_v6 }
 0x118   : > { %v1032_v63 = vrot.slane %v1024_v55, %v4181_v15  ;;  %v2531_v2 = vcombine.low %v1985_v54, %v1989_v56  ;;  %v2532_v3 = vcombine.low %v1993_v57, %v1997_v58  ;;  %v1877_v5 = vrot.slane %v1808_v46, %v4160_v7 }
 0x119   : > { %1636 = vperm.xlu1 %3716, %v991_v48   ;;  %v1039_v14 = vrot.slane %v1025_v59, %v4181_v15  ;;  %v2539_v16 = vrot.slane %v2529_v60, %v4181_v15  ;;  %v2546_v21 = vrot.slane %v2530_v61, %v4181_v15  ;;  %v1881_v17 = vrot.slane %v1808_v46, %v4163_v8 }
 0x11a   : > { %v2553_v19 = vrot.slane %v2531_v2, %v4181_v15  ;;  %v2560_v20 = vrot.slane %v2532_v3, %v4181_v15  ;;  %v1885_v22 = vrot.slane %v1808_v46, %v4166_v9  ;;  %v1889_v23 = vrot.slane %v1808_v46, %v4169_v10  ;;  %v1823_v3 = vpop.xlane.xlu1 %1822 }
 0x11b   : > { %v1040_v24 = vcombine.low %v1032_v63, %v1039_v14  ;;  %v2561_v25 = vcombine.low %v2539_v16, %v2546_v21  ;;  %v1893_v26 = vrot.slane %v1808_v46, %v4172_v11  ;;  %v1897_v27 = vrot.slane %v1808_v46, %v4175_v12 }
 0x11c   : > { %v2562_v28 = vcombine.low %v2553_v19, %v2560_v20  ;;  %v1901_v30 = vrot.slane %v1808_v46, %v4178_v13  ;;  %v2382_v31 = vcombine.low %v1873_v62, %v1877_v5  ;;  %v2383_v32 = vcombine.low %v1881_v17, %v1885_v22 }
 0x11d   : > { %1639 = vperm.xlu1 %3716, %v1040_v24   ;;  %v2569_v33 = vrot.slane %v2561_v25, %v4181_v15  ;;  %v2384_v34 = vcombine.low %v1889_v23, %v1893_v26  ;;  %v2001_v35 = vrot.slane %v1820_v18, %v4157_v6  ;;  %v2005_v36 = vrot.slane %v1820_v18, %v4160_v7 }
 0x11e   : > { %v2576_v37 = vrot.slane %v2562_v28, %v4181_v15  ;;  %v2385_v38 = vcombine.low %v1897_v27, %v1901_v30  ;;  %v2392_v39 = vrot.slane %v2382_v31, %v4181_v15  ;;  %v2399_v40 = vrot.slane %v2383_v32, %v4181_v15 }
 0x11f   : > { %v2406_v41 = vrot.slane %v2384_v34, %v4181_v15  ;;  %v2009_v42 = vrot.slane %v1820_v18, %v4163_v8  ;;  %v2013_v43 = vrot.slane %v1820_v18, %v4166_v9  ;;  %v2017_v44 = vrot.slane %v1820_v18, %v4169_v10  ;;  %v283_v34 = vpop.xlane.xlu0 %282 }
 0x120   : > { %v2577_v45 = vcombine.low %v2569_v33, %v2576_v37  ;;  %v2413_v46 = vrot.slane %v2385_v38, %v4181_v15  ;;  %v2414_v48 = vcombine.low %v2392_v39, %v2399_v40  ;;  %v2021_v49 = vrot.slane %v1820_v18, %v4172_v11 }
 0x121   : > { %v2025_v50 = vrot.slane %v1820_v18, %v4175_v12  ;;  %v2029_v51 = vrot.slane %v1820_v18, %v4178_v13  ;;  %v2578_v29 = vcombine.low %v2001_v35, %v2005_v36  ;;  %v2579_v52 = vcombine.low %v2009_v42, %v2013_v43 }
 0x122   : > { %3176 = vperm.xlu0 %3715, %v2577_v45   ;;  %v2415_v53 = vcombine.low %v2406_v41, %v2413_v46  ;;  %v2422_v54 = vrot.slane %v2414_v48, %v4181_v15  ;;  %v2580_v55 = vcombine.low %v2017_v44, %v2021_v49  ;;  %v1905_v56 = vrot.slane %v4209_v47, %v4157_v6 }
 0x123   : > { %v2581_v57 = vcombine.low %v2025_v50, %v2029_v51  ;;  %v2588_v58 = vrot.slane %v2578_v29, %v4181_v15  ;;  %v2595_v59 = vrot.slane %v2579_v52, %v4181_v15  ;;  %v1909_v60 = vrot.slane %v4209_v47, %v4160_v7 }
 0x124   : > { %v2429_v61 = vrot.slane %v2415_v53, %v4181_v15  ;;  %v2602_v62 = vrot.slane %v2580_v55, %v4181_v15  ;;  %v1913_v63 = vrot.slane %v4209_v47, %v4163_v8  ;;  %v1917_v2 = vrot.slane %v4209_v47, %v4166_v9  ;;  %v1826_v55 = vpop.xlane.xlu1 %1825 }
 0x125   : > { %v2609_v5 = vrot.slane %v2581_v57, %v4181_v15  ;;  %v2610_v14 = vcombine.low %v2588_v58, %v2595_v59  ;;  %v1921_v16 = vrot.slane %v4209_v47, %v4169_v10  ;;  %v1925_v21 = vrot.slane %v4209_v47, %v4172_v11 }
 0x126   : > { %v2430_v17 = vcombine.low %v2422_v54, %v2429_v61  ;;  %v1929_v18 = vrot.slane %v4209_v47, %v4175_v12  ;;  %v1933_v19 = vrot.slane %v4209_v47, %v4178_v13  ;;  %v2431_v20 = vcombine.low %v1905_v56, %v1909_v60 }
 0x127   : > { %v2611_v22 = vcombine.low %v2602_v62, %v2609_v5  ;;  %v2618_v23 = vrot.slane %v2610_v14, %v4181_v15  ;;  %v2432_v24 = vcombine.low %v1913_v63, %v1917_v2  ;;  %v2433_v25 = vcombine.low %v1921_v16, %v1925_v21 }
 0x128   : > { %3167 = vperm.xlu1 %3716, %v2430_v17   ;;  %v2434_v26 = vcombine.low %v1929_v18, %v1933_v19  ;;  %v2441_v27 = vrot.slane %v2431_v20, %v4181_v15  ;;  %v2033_v28 = vrot.slane %v1823_v3, %v4157_v6  ;;  %v2037_v30 = vrot.slane %v1823_v3, %v4160_v7 }
 0x129   : > { %v2625_v31 = vrot.slane %v2611_v22, %v4181_v15  ;;  %v2448_v32 = vrot.slane %v2432_v24, %v4181_v15  ;;  %v2455_v47 = vrot.slane %v2433_v25, %v4181_v15  ;;  %v2041_v33 = vrot.slane %v1823_v3, %v4163_v8 }
 0x12a   : > { %v2462_v35 = vrot.slane %v2434_v26, %v4181_v15  ;;  %v2045_v36 = vrot.slane %v1823_v3, %v4166_v9  ;;  %v2049_v37 = vrot.slane %v1823_v3, %v4169_v10  ;;  %v2053_v38 = vrot.slane %v1823_v3, %v4172_v11 }
 0x12b   : > { %v2626_v39 = vcombine.low %v2618_v23, %v2625_v31  ;;  %v2463_v40 = vcombine.low %v2441_v27, %v2448_v32  ;;  %v2057_v41 = vrot.slane %v1823_v3, %v4175_v12  ;;  %v2061_v42 = vrot.slane %v1823_v3, %v4178_v13 }
 0x12c   : > { %v2464_v43 = vcombine.low %v2455_v47, %v2462_v35  ;;  %v2627_v44 = vcombine.low %v2033_v28, %v2037_v30  ;;  %v2628_v45 = vcombine.low %v2041_v33, %v2045_v36  ;;  %v2629_v46 = vcombine.low %v2049_v37, %v2053_v38 }
 0x12d   : > { %3179 = vperm.xlu0 %3715, %v2626_v39   ;;  %v2471_v48 = vrot.slane %v2463_v40, %v4181_v15  ;;  %v2630_v49 = vcombine.low %v2057_v41, %v2061_v42  ;;  %v464_v50 = vrot.slane %v283_v34, %v4157_v6  ;;  %v468_v51 = vrot.slane %v283_v34, %v4160_v7 }
 0x12e   : > { %v2478_v29 = vrot.slane %v2464_v43, %v4181_v15  ;;  %v2637_v52 = vrot.slane %v2627_v44, %v4181_v15  ;;  %v2644_v53 = vrot.slane %v2628_v45, %v4181_v15  ;;  %v2651_v54 = vrot.slane %v2629_v46, %v4181_v15 }
 0x12f   : > { %v2658_v56 = vrot.slane %v2630_v49, %v4181_v15  ;;  %v472_v57 = vrot.slane %v283_v34, %v4163_v8  ;;  %v476_v58 = vrot.slane %v283_v34, %v4166_v9  ;;  %v480_v59 = vrot.slane %v283_v34, %v4169_v10  ;;  %v1829_v49 = vpop.xlane.xlu1 %1828 }
 0x130   : > { %v2479_v60 = vcombine.low %v2471_v48, %v2478_v29  ;;  %v2659_v61 = vcombine.low %v2637_v52, %v2644_v53  ;;  %v484_v62 = vrot.slane %v283_v34, %v4172_v11  ;;  %v488_v63 = vrot.slane %v283_v34, %v4175_v12 }
 0x131   : > { %v2660_v2 = vcombine.low %v2651_v54, %v2658_v56  ;;  %v492_v3 = vrot.slane %v283_v34, %v4178_v13  ;;  %v1041_v5 = vcombine.low %v464_v50, %v468_v51  ;;  %v1042_v14 = vcombine.low %v472_v57, %v476_v58 }
 0x132   : > { %3170 = vperm.xlu1 %3716, %v2479_v60   ;;  %v2667_v16 = vrot.slane %v2659_v61, %v4181_v15  ;;  %v1043_v21 = vcombine.low %v480_v59, %v484_v62  ;;  %v2065_v17 = vrot.slane %v1826_v55, %v4157_v6  ;;  %v2069_v18 = vrot.slane %v1826_v55, %v4160_v7 }
 0x133   : > { %v2674_v19 = vrot.slane %v2660_v2, %v4181_v15  ;;  %v1044_v20 = vcombine.low %v488_v63, %v492_v3  ;;  %v1051_v22 = vrot.slane %v1041_v5, %v4181_v15  ;;  %v1058_v23 = vrot.slane %v1042_v14, %v4181_v15 }
 0x134   : > { %v1065_v24 = vrot.slane %v1043_v21, %v4181_v15  ;;  %v2073_v25 = vrot.slane %v1826_v55, %v4163_v8  ;;  %v2077_v26 = vrot.slane %v1826_v55, %v4166_v9  ;;  %v2081_v27 = vrot.slane %v1826_v55, %v4169_v10 }
 0x135   : > { %v2675_v28 = vcombine.low %v2667_v16, %v2674_v19  ;;  %v1072_v30 = vrot.slane %v1044_v20, %v4181_v15  ;;  %v1073_v31 = vcombine.low %v1051_v22, %v1058_v23  ;;  %v2085_v32 = vrot.slane %v1826_v55, %v4172_v11  ;;  %v286_v16 = vpop.xlane.xlu0 %285 }
 0x136   : > { %v2089_v47 = vrot.slane %v1826_v55, %v4175_v12  ;;  %v2093_v33 = vrot.slane %v1826_v55, %v4178_v13  ;;  %v2676_v34 = vcombine.low %v2065_v17, %v2069_v18  ;;  %v2677_v35 = vcombine.low %v2073_v25, %v2077_v26 }
 0x137   : > { %3182 = vperm.xlu0 %3715, %v2675_v28   ;;  %v1074_v36 = vcombine.low %v1065_v24, %v1072_v30  ;;  %v1081_v37 = vrot.slane %v1073_v31, %v4181_v15  ;;  %v2678_v38 = vcombine.low %v2081_v27, %v2085_v32  ;;  %v1937_v39 = vrot.slane %v4219_v0, %v4157_v6 }
 0x138   : > { %v2679_v40 = vcombine.low %v2089_v47, %v2093_v33  ;;  %v2686_v41 = vrot.slane %v2676_v34, %v4181_v15  ;;  %v2693_v42 = vrot.slane %v2677_v35, %v4181_v15  ;;  %v1941_v43 = vrot.slane %v4219_v0, %v4160_v7 }
 0x139   : > { %v1088_v44 = vrot.slane %v1074_v36, %v4181_v15  ;;  %v2700_v45 = vrot.slane %v2678_v38, %v4181_v15  ;;  %v1945_v46 = vrot.slane %v4219_v0, %v4163_v8  ;;  %v1949_v48 = vrot.slane %v4219_v0, %v4166_v9 }
 0x13a   : > { %v2707_v50 = vrot.slane %v2679_v40, %v4181_v15  ;;  %v2708_v51 = vcombine.low %v2686_v41, %v2693_v42  ;;  %v1953_v29 = vrot.slane %v4219_v0, %v4169_v10  ;;  %v1957_v52 = vrot.slane %v4219_v0, %v4172_v11 }
 0x13b   : > { %v1089_v53 = vcombine.low %v1081_v37, %v1088_v44  ;;  %v1961_v54 = vrot.slane %v4219_v0, %v4175_v12  ;;  %v1965_v55 = vrot.slane %v4219_v0, %v4178_v13  ;;  %v2480_v56 = vcombine.low %v1937_v39, %v1941_v43  ;;  %v1832_v37 = vpop.xlane.xlu1 %1831 }
 0x13c   : > { %v2709_v57 = vcombine.low %v2700_v45, %v2707_v50  ;;  %v2716_v58 = vrot.slane %v2708_v51, %v4181_v15  ;;  %v2481_v59 = vcombine.low %v1945_v46, %v1949_v48  ;;  %v2482_v60 = vcombine.low %v1953_v29, %v1957_v52 }
 0x13d   : > { %1642 = vperm.xlu1 %3716, %v1089_v53   ;;  %v2483_v61 = vcombine.low %v1961_v54, %v1965_v55  ;;  %v2490_v62 = vrot.slane %v2480_v56, %v4181_v15  ;;  %v2097_v63 = vrot.slane %v1829_v49, %v4157_v6  ;;  %v2101_v2 = vrot.slane %v1829_v49, %v4160_v7 }
 0x13e   : > { %v2723_v3 = vrot.slane %v2709_v57, %v4181_v15  ;;  %v2497_v5 = vrot.slane %v2481_v59, %v4181_v15  ;;  %v2504_v0 = vrot.slane %v2482_v60, %v4181_v15  ;;  %v2105_v14 = vrot.slane %v1829_v49, %v4163_v8 }
 0x13f   : > { %v2511_v21 = vrot.slane %v2483_v61, %v4181_v15  ;;  %v2109_v17 = vrot.slane %v1829_v49, %v4166_v9  ;;  %v2113_v18 = vrot.slane %v1829_v49, %v4169_v10  ;;  %v2117_v19 = vrot.slane %v1829_v49, %v4172_v11 }
 0x140   : > { %v2724_v20 = vcombine.low %v2716_v58, %v2723_v3  ;;  %v2512_v22 = vcombine.low %v2490_v62, %v2497_v5  ;;  %v2121_v23 = vrot.slane %v1829_v49, %v4175_v12  ;;  %v2125_v24 = vrot.slane %v1829_v49, %v4178_v13  ;;  %v289_v58 = vpop.xlane.xlu0 %288 }
 0x141   : > { %v2513_v25 = vcombine.low %v2504_v0, %v2511_v21  ;;  %v2725_v26 = vcombine.low %v2097_v63, %v2101_v2  ;;  %v2726_v27 = vcombine.low %v2105_v14, %v2109_v17  ;;  %v2727_v28 = vcombine.low %v2113_v18, %v2117_v19 }
 0x142   : > { %3185 = vperm.xlu0 %3715, %v2724_v20   ;;  %v2520_v30 = vrot.slane %v2512_v22, %v4181_v15  ;;  %v2728_v31 = vcombine.low %v2121_v23, %v2125_v24  ;;  %v496_v32 = vrot.slane %v286_v16, %v4157_v6  ;;  %v500_v47 = vrot.slane %v286_v16, %v4160_v7 }
 0x143   : > { %v2527_v33 = vrot.slane %v2513_v25, %v4181_v15  ;;  %v2735_v34 = vrot.slane %v2725_v26, %v4181_v15  ;;  %v2742_v35 = vrot.slane %v2726_v27, %v4181_v15  ;;  %v2749_v36 = vrot.slane %v2727_v28, %v4181_v15 }
 0x144   : > { %v2756_v38 = vrot.slane %v2728_v31, %v4181_v15  ;;  %v504_v39 = vrot.slane %v286_v16, %v4163_v8  ;;  %v508_v40 = vrot.slane %v286_v16, %v4166_v9  ;;  %v512_v41 = vrot.slane %v286_v16, %v4169_v10  ;;  %v1835_v31 = vpop.xlane.xlu1 %1834 }
 0x145   : > { %v2528_v42 = vcombine.low %v2520_v30, %v2527_v33  ;;  %v2757_v43 = vcombine.low %v2735_v34, %v2742_v35  ;;  %v516_v44 = vrot.slane %v286_v16, %v4172_v11  ;;  %v520_v45 = vrot.slane %v286_v16, %v4175_v12 }
 0x146   : > { %v2758_v46 = vcombine.low %v2749_v36, %v2756_v38  ;;  %v524_v48 = vrot.slane %v286_v16, %v4178_v13  ;;  %v1090_v49 = vcombine.low %v496_v32, %v500_v47  ;;  %v1091_v50 = vcombine.low %v504_v39, %v508_v40 }
 0x147   : > { %3173 = vperm.xlu1 %3716, %v2528_v42   ;;  %v2765_v51 = vrot.slane %v2757_v43, %v4181_v15  ;;  %v1092_v29 = vcombine.low %v512_v41, %v516_v44  ;;  %v2129_v52 = vrot.slane %v1832_v37, %v4157_v6  ;;  %v2133_v53 = vrot.slane %v1832_v37, %v4160_v7 }
 0x148   : > { %v2772_v54 = vrot.slane %v2758_v46, %v4181_v15  ;;  %v1093_v55 = vcombine.low %v520_v45, %v524_v48  ;;  %v1100_v56 = vrot.slane %v1090_v49, %v4181_v15  ;;  %v1107_v57 = vrot.slane %v1091_v50, %v4181_v15 }
 0x149   : > { %v1114_v59 = vrot.slane %v1092_v29, %v4181_v15  ;;  %v2137_v60 = vrot.slane %v1832_v37, %v4163_v8  ;;  %v2141_v61 = vrot.slane %v1832_v37, %v4166_v9  ;;  %v2145_v62 = vrot.slane %v1832_v37, %v4169_v10  ;;  %v292_v29 = vpop.xlane.xlu0 %291 }
 0x14a   : > { %v2773_v63 = vcombine.low %v2765_v51, %v2772_v54  ;;  %v1121_v2 = vrot.slane %v1093_v55, %v4181_v15  ;;  %v1122_v3 = vcombine.low %v1100_v56, %v1107_v57  ;;  %v2149_v5 = vrot.slane %v1832_v37, %v4172_v11 }
 0x14b   : > { %v2153_v0 = vrot.slane %v1832_v37, %v4175_v12  ;;  %v2157_v14 = vrot.slane %v1832_v37, %v4178_v13  ;;  %v2774_v16 = vcombine.low %v2129_v52, %v2133_v53  ;;  %v2775_v21 = vcombine.low %v2137_v60, %v2141_v61 }
 0x14c   : > { %3188 = vperm.xlu0 %3715, %v2773_v63   ;;  %v1123_v17 = vcombine.low %v1114_v59, %v1121_v2  ;;  %v1130_v18 = vrot.slane %v1122_v3, %v4181_v15  ;;  %v2776_v19 = vcombine.low %v2145_v62, %v2149_v5  ;;  %v528_v20 = vrot.slane %v289_v58, %v4157_v6 }
 0x14d   : > { %v2777_v22 = vcombine.low %v2153_v0, %v2157_v14  ;;  %v2784_v23 = vrot.slane %v2774_v16, %v4181_v15  ;;  %v2791_v24 = vrot.slane %v2775_v21, %v4181_v15  ;;  %v532_v25 = vrot.slane %v289_v58, %v4160_v7 }
 0x14e   : > { %v1137_v26 = vrot.slane %v1123_v17, %v4181_v15  ;;  %v2798_v27 = vrot.slane %v2776_v19, %v4181_v15  ;;  %v536_v28 = vrot.slane %v289_v58, %v4163_v8  ;;  %v540_v30 = vrot.slane %v289_v58, %v4166_v9 }
 0x14f   : > { %v2805_v32 = vrot.slane %v2777_v22, %v4181_v15  ;;  %v2806_v47 = vcombine.low %v2784_v23, %v2791_v24  ;;  %v544_v33 = vrot.slane %v289_v58, %v4169_v10  ;;  %v548_v34 = vrot.slane %v289_v58, %v4172_v11 }
 0x150   : > { %v1138_v35 = vcombine.low %v1130_v18, %v1137_v26  ;;  %v552_v36 = vrot.slane %v289_v58, %v4175_v12  ;;  %v556_v37 = vrot.slane %v289_v58, %v4178_v13  ;;  %v1139_v38 = vcombine.low %v528_v20, %v532_v25  ;;  %v1838_v18 = vpop.xlane.xlu1 %1837 }
 0x151   : > { %v2807_v39 = vcombine.low %v2798_v27, %v2805_v32  ;;  %v2814_v40 = vrot.slane %v2806_v47, %v4181_v15  ;;  %v1140_v41 = vcombine.low %v536_v28, %v540_v30  ;;  %v1141_v42 = vcombine.low %v544_v33, %v548_v34 }
 0x152   : > { %1645 = vperm.xlu1 %3716, %v1138_v35   ;;  %v1142_v43 = vcombine.low %v552_v36, %v556_v37  ;;  %v1149_v44 = vrot.slane %v1139_v38, %v4181_v15  ;;  %v2161_v45 = vrot.slane %v1835_v31, %v4157_v6  ;;  %v2165_v46 = vrot.slane %v1835_v31, %v4160_v7 }
 0x153   : > { %v2821_v48 = vrot.slane %v2807_v39, %v4181_v15  ;;  %v1156_v49 = vrot.slane %v1140_v41, %v4181_v15  ;;  %v1163_v50 = vrot.slane %v1141_v42, %v4181_v15  ;;  %v2169_v51 = vrot.slane %v1835_v31, %v4163_v8 }
 0x154   : > { %v1170_v52 = vrot.slane %v1142_v43, %v4181_v15  ;;  %v2173_v53 = vrot.slane %v1835_v31, %v4166_v9  ;;  %v2177_v54 = vrot.slane %v1835_v31, %v4169_v10  ;;  %v2181_v55 = vrot.slane %v1835_v31, %v4172_v11 }
 0x155   : > { %v2822_v56 = vcombine.low %v2814_v40, %v2821_v48  ;;  %v1171_v57 = vcombine.low %v1149_v44, %v1156_v49  ;;  %v2185_v58 = vrot.slane %v1835_v31, %v4175_v12  ;;  %v2189_v59 = vrot.slane %v1835_v31, %v4178_v13  ;;  %v295_v40 = vpop.xlane.xlu0 %294 }
 0x156   : > { %v1172_v60 = vcombine.low %v1163_v50, %v1170_v52  ;;  %v2823_v61 = vcombine.low %v2161_v45, %v2165_v46  ;;  %v2824_v62 = vcombine.low %v2169_v51, %v2173_v53  ;;  %v2825_v63 = vcombine.low %v2177_v54, %v2181_v55 }
 0x157   : > { %3191 = vperm.xlu0 %3715, %v2822_v56   ;;  %v1179_v2 = vrot.slane %v1171_v57, %v4181_v15  ;;  %v2826_v3 = vcombine.low %v2185_v58, %v2189_v59  ;;  %v560_v5 = vrot.slane %v292_v29, %v4157_v6  ;;  %v564_v0 = vrot.slane %v292_v29, %v4160_v7 }
 0x158   : > { %v1186_v14 = vrot.slane %v1172_v60, %v4181_v15  ;;  %v2833_v16 = vrot.slane %v2823_v61, %v4181_v15  ;;  %v2840_v21 = vrot.slane %v2824_v62, %v4181_v15  ;;  %v2847_v17 = vrot.slane %v2825_v63, %v4181_v15 }
 0x159   : > { %v2854_v19 = vrot.slane %v2826_v3, %v4181_v15  ;;  %v568_v20 = vrot.slane %v292_v29, %v4163_v8  ;;  %v572_v22 = vrot.slane %v292_v29, %v4166_v9  ;;  %v576_v23 = vrot.slane %v292_v29, %v4169_v10  ;;  %v1841_v3 = vpop.xlane.xlu1 %1840 }
 0x15a   : > { %v1187_v24 = vcombine.low %v1179_v2, %v1186_v14  ;;  %v2855_v25 = vcombine.low %v2833_v16, %v2840_v21  ;;  %v580_v26 = vrot.slane %v292_v29, %v4172_v11  ;;  %v584_v27 = vrot.slane %v292_v29, %v4175_v12 }
 0x15b   : > { %v2856_v28 = vcombine.low %v2847_v17, %v2854_v19  ;;  %v588_v30 = vrot.slane %v292_v29, %v4178_v13  ;;  %v1188_v31 = vcombine.low %v560_v5, %v564_v0  ;;  %v1189_v32 = vcombine.low %v568_v20, %v572_v22 }
 0x15c   : > { %1648 = vperm.xlu1 %3716, %v1187_v24   ;;  %v2863_v47 = vrot.slane %v2855_v25, %v4181_v15  ;;  %v1190_v33 = vcombine.low %v576_v23, %v580_v26  ;;  %v2193_v34 = vrot.slane %v1838_v18, %v4157_v6  ;;  %v2197_v35 = vrot.slane %v1838_v18, %v4160_v7 }
 0x15d   : > { %v2870_v36 = vrot.slane %v2856_v28, %v4181_v15  ;;  %v1191_v37 = vcombine.low %v584_v27, %v588_v30  ;;  %v1198_v38 = vrot.slane %v1188_v31, %v4181_v15  ;;  %v1205_v39 = vrot.slane %v1189_v32, %v4181_v15 }
 0x15e   : > { %v1212_v41 = vrot.slane %v1190_v33, %v4181_v15  ;;  %v2201_v42 = vrot.slane %v1838_v18, %v4163_v8  ;;  %v2205_v43 = vrot.slane %v1838_v18, %v4166_v9  ;;  %v2209_v44 = vrot.slane %v1838_v18, %v4169_v10  ;;  %v298_v33 = vpop.xlane.xlu0 %297 }
 0x15f   : > { %v2871_v45 = vcombine.low %v2863_v47, %v2870_v36  ;;  %v1219_v46 = vrot.slane %v1191_v37, %v4181_v15  ;;  %v1220_v48 = vcombine.low %v1198_v38, %v1205_v39  ;;  %v2213_v49 = vrot.slane %v1838_v18, %v4172_v11 }
 0x160   : > { %v2217_v50 = vrot.slane %v1838_v18, %v4175_v12  ;;  %v2221_v51 = vrot.slane %v1838_v18, %v4178_v13  ;;  %v2872_v29 = vcombine.low %v2193_v34, %v2197_v35  ;;  %v2873_v52 = vcombine.low %v2201_v42, %v2205_v43 }
 0x161   : > { %3194 = vperm.xlu0 %3715, %v2871_v45   ;;  %v1221_v53 = vcombine.low %v1212_v41, %v1219_v46  ;;  %v1228_v54 = vrot.slane %v1220_v48, %v4181_v15  ;;  %v2874_v55 = vcombine.low %v2209_v44, %v2213_v49  ;;  %v592_v56 = vrot.slane %v295_v40, %v4157_v6 }
 0x162   : > { %v2875_v57 = vcombine.low %v2217_v50, %v2221_v51  ;;  %v2882_v58 = vrot.slane %v2872_v29, %v4181_v15  ;;  %v2889_v59 = vrot.slane %v2873_v52, %v4181_v15  ;;  %v596_v60 = vrot.slane %v295_v40, %v4160_v7 }
 0x163   : > { %v1235_v61 = vrot.slane %v1221_v53, %v4181_v15  ;;  %v2896_v62 = vrot.slane %v2874_v55, %v4181_v15  ;;  %v600_v63 = vrot.slane %v295_v40, %v4163_v8  ;;  %v604_v2 = vrot.slane %v295_v40, %v4166_v9 }
 0x164   : > { %v2903_v5 = vrot.slane %v2875_v57, %v4181_v15  ;;  %v2904_v0 = vcombine.low %v2882_v58, %v2889_v59  ;;  %v608_v14 = vrot.slane %v295_v40, %v4169_v10  ;;  %v612_v16 = vrot.slane %v295_v40, %v4172_v11 }
 0x165   : > { %v1236_v21 = vcombine.low %v1228_v54, %v1235_v61  ;;  %v616_v17 = vrot.slane %v295_v40, %v4175_v12  ;;  %v620_v18 = vrot.slane %v295_v40, %v4178_v13  ;;  %v1237_v19 = vcombine.low %v592_v56, %v596_v60  ;;  %v1844_v54 = vpop.xlane.xlu1 %1843 }
 0x166   : > { %v2905_v20 = vcombine.low %v2896_v62, %v2903_v5  ;;  %v2912_v22 = vrot.slane %v2904_v0, %v4181_v15  ;;  %v1238_v23 = vcombine.low %v600_v63, %v604_v2  ;;  %v1239_v24 = vcombine.low %v608_v14, %v612_v16 }
 0x167   : > { %1651 = vperm.xlu1 %3716, %v1236_v21   ;;  %v1240_v25 = vcombine.low %v616_v17, %v620_v18  ;;  %v1247_v26 = vrot.slane %v1237_v19, %v4181_v15  ;;  %v2225_v27 = vrot.slane %v1841_v3, %v4157_v6  ;;  %v2229_v28 = vrot.slane %v1841_v3, %v4160_v7 }
 0x168   : > { %v2919_v30 = vrot.slane %v2905_v20, %v4181_v15  ;;  %v1254_v31 = vrot.slane %v1238_v23, %v4181_v15  ;;  %v1261_v32 = vrot.slane %v1239_v24, %v4181_v15  ;;  %v2233_v47 = vrot.slane %v1841_v3, %v4163_v8 }
 0x169   : > { %v1268_v34 = vrot.slane %v1240_v25, %v4181_v15  ;;  %v2237_v35 = vrot.slane %v1841_v3, %v4166_v9  ;;  %v2241_v36 = vrot.slane %v1841_v3, %v4169_v10  ;;  %v2245_v37 = vrot.slane %v1841_v3, %v4172_v11 }
 0x16a   : > { %v2920_v38 = vcombine.low %v2912_v22, %v2919_v30  ;;  %v1269_v39 = vcombine.low %v1247_v26, %v1254_v31  ;;  %v2249_v40 = vrot.slane %v1841_v3, %v4175_v12  ;;  %v2253_v41 = vrot.slane %v1841_v3, %v4178_v13  ;;  %v301_v22 = vpop.xlane.xlu0 %300 }
 0x16b   : > { %v1270_v42 = vcombine.low %v1261_v32, %v1268_v34  ;;  %v2921_v43 = vcombine.low %v2225_v27, %v2229_v28  ;;  %v2922_v44 = vcombine.low %v2233_v47, %v2237_v35  ;;  %v2923_v45 = vcombine.low %v2241_v36, %v2245_v37 }
 0x16c   : > { %3197 = vperm.xlu0 %3715, %v2920_v38   ;;  %v1277_v46 = vrot.slane %v1269_v39, %v4181_v15  ;;  %v2924_v48 = vcombine.low %v2249_v40, %v2253_v41  ;;  %v624_v49 = vrot.slane %v298_v33, %v4157_v6  ;;  %v628_v50 = vrot.slane %v298_v33, %v4160_v7 }
 0x16d   : > { %v1284_v51 = vrot.slane %v1270_v42, %v4181_v15  ;;  %v2931_v29 = vrot.slane %v2921_v43, %v4181_v15  ;;  %v2938_v52 = vrot.slane %v2922_v44, %v4181_v15  ;;  %v2945_v53 = vrot.slane %v2923_v45, %v4181_v15 }
 0x16e   : > { %v2952_v55 = vrot.slane %v2924_v48, %v4181_v15  ;;  %v632_v56 = vrot.slane %v298_v33, %v4163_v8  ;;  %v636_v57 = vrot.slane %v298_v33, %v4166_v9  ;;  %v640_v58 = vrot.slane %v298_v33, %v4169_v10  ;;  %v1847_v48 = vpop.xlane.xlu1 %1846 }
 0x16f   : > { %v1285_v59 = vcombine.low %v1277_v46, %v1284_v51  ;;  %v2953_v60 = vcombine.low %v2931_v29, %v2938_v52  ;;  %v644_v61 = vrot.slane %v298_v33, %v4172_v11  ;;  %v648_v62 = vrot.slane %v298_v33, %v4175_v12 }
 0x170   : > { %v2954_v63 = vcombine.low %v2945_v53, %v2952_v55  ;;  %v652_v2 = vrot.slane %v298_v33, %v4178_v13  ;;  %v1286_v3 = vcombine.low %v624_v49, %v628_v50  ;;  %v1287_v5 = vcombine.low %v632_v56, %v636_v57 }
 0x171   : > { %1654 = vperm.xlu1 %3716, %v1285_v59   ;;  %v2961_v0 = vrot.slane %v2953_v60, %v4181_v15  ;;  %v1288_v14 = vcombine.low %v640_v58, %v644_v61  ;;  %v2257_v16 = vrot.slane %v1844_v54, %v4157_v6  ;;  %v2261_v21 = vrot.slane %v1844_v54, %v4160_v7 }
 0x172   : > { %v2968_v17 = vrot.slane %v2954_v63, %v4181_v15  ;;  %v1289_v18 = vcombine.low %v648_v62, %v652_v2  ;;  %v1296_v19 = vrot.slane %v1286_v3, %v4181_v15  ;;  %v1303_v20 = vrot.slane %v1287_v5, %v4181_v15 }
 0x173   : > { %v1310_v23 = vrot.slane %v1288_v14, %v4181_v15  ;;  %v2265_v24 = vrot.slane %v1844_v54, %v4163_v8  ;;  %v2269_v25 = vrot.slane %v1844_v54, %v4166_v9  ;;  %v2273_v26 = vrot.slane %v1844_v54, %v4169_v10  ;;  %v304_v14 = vpop.xlane.xlu0 %303 }
 0x174   : > { %v2969_v27 = vcombine.low %v2961_v0, %v2968_v17  ;;  %v1317_v28 = vrot.slane %v1289_v18, %v4181_v15  ;;  %v1318_v30 = vcombine.low %v1296_v19, %v1303_v20  ;;  %v2277_v31 = vrot.slane %v1844_v54, %v4172_v11 }
 0x175   : > { %v2281_v32 = vrot.slane %v1844_v54, %v4175_v12  ;;  %v2285_v47 = vrot.slane %v1844_v54, %v4178_v13  ;;  %v2970_v33 = vcombine.low %v2257_v16, %v2261_v21  ;;  %v2971_v34 = vcombine.low %v2265_v24, %v2269_v25 }
 0x176   : > { %3200 = vperm.xlu0 %3715, %v2969_v27   ;;  %v1319_v35 = vcombine.low %v1310_v23, %v1317_v28  ;;  %v1326_v36 = vrot.slane %v1318_v30, %v4181_v15  ;;  %v2972_v37 = vcombine.low %v2273_v26, %v2277_v31  ;;  %v656_v38 = vrot.slane %v301_v22, %v4157_v6 }
 0x177   : > { %v2973_v39 = vcombine.low %v2281_v32, %v2285_v47  ;;  %v2980_v40 = vrot.slane %v2970_v33, %v4181_v15  ;;  %v2987_v41 = vrot.slane %v2971_v34, %v4181_v15  ;;  %v660_v42 = vrot.slane %v301_v22, %v4160_v7 }
 0x178   : > { %v1333_v43 = vrot.slane %v1319_v35, %v4181_v15  ;;  %v2994_v44 = vrot.slane %v2972_v37, %v4181_v15  ;;  %v664_v45 = vrot.slane %v301_v22, %v4163_v8  ;;  %v668_v46 = vrot.slane %v301_v22, %v4166_v9 }
 0x179   : > { %v3001_v49 = vrot.slane %v2973_v39, %v4181_v15  ;;  %v3002_v50 = vcombine.low %v2980_v40, %v2987_v41  ;;  %v672_v51 = vrot.slane %v301_v22, %v4169_v10  ;;  %v676_v29 = vrot.slane %v301_v22, %v4172_v11 }
 0x17a   : > { %v1334_v52 = vcombine.low %v1326_v36, %v1333_v43  ;;  %v680_v53 = vrot.slane %v301_v22, %v4175_v12  ;;  %v684_v54 = vrot.slane %v301_v22, %v4178_v13  ;;  %v1335_v55 = vcombine.low %v656_v38, %v660_v42  ;;  %v1853_v36 = vpop.xlane.xlu1 %1852 }
 0x17b   : > { %v3003_v56 = vcombine.low %v2994_v44, %v3001_v49  ;;  %v3010_v57 = vrot.slane %v3002_v50, %v4181_v15  ;;  %v1336_v58 = vcombine.low %v664_v45, %v668_v46  ;;  %v1337_v59 = vcombine.low %v672_v51, %v676_v29  ;;  %v307_v45 = vpop.xlane.xlu0 %306 }
 0x17c   : > { %1657 = vperm.xlu1 %3716, %v1334_v52   ;;  %v1338_v60 = vcombine.low %v680_v53, %v684_v54  ;;  %v1345_v61 = vrot.slane %v1335_v55, %v4181_v15  ;;  %v2289_v62 = vrot.slane %v1847_v48, %v4157_v6  ;;  %v2293_v63 = vrot.slane %v1847_v48, %v4160_v7 }
 0x17d   : > { %v3017_v2 = vrot.slane %v3003_v56, %v4181_v15  ;;  %v1352_v3 = vrot.slane %v1336_v58, %v4181_v15  ;;  %v1359_v5 = vrot.slane %v1337_v59, %v4181_v15  ;;  %v2297_v0 = vrot.slane %v1847_v48, %v4163_v8 }
 0x17e   : > { %v1366_v16 = vrot.slane %v1338_v60, %v4181_v15  ;;  %v2301_v21 = vrot.slane %v1847_v48, %v4166_v9  ;;  %v2305_v17 = vrot.slane %v1847_v48, %v4169_v10  ;;  %v2309_v18 = vrot.slane %v1847_v48, %v4172_v11 }
 0x17f   : > { %v3018_v19 = vcombine.low %v3010_v57, %v3017_v2  ;;  %v1367_v20 = vcombine.low %v1345_v61, %v1352_v3  ;;  %v2313_v22 = vrot.slane %v1847_v48, %v4175_v12  ;;  %v2317_v23 = vrot.slane %v1847_v48, %v4178_v13 }
 0x180   : > { %v1368_v24 = vcombine.low %v1359_v5, %v1366_v16  ;;  %v3019_v25 = vcombine.low %v2289_v62, %v2293_v63  ;;  %v3020_v26 = vcombine.low %v2297_v0, %v2301_v21  ;;  %v3021_v27 = vcombine.low %v2305_v17, %v2309_v18  ;;  %v310_v21 = vpop.xlane.xlu0 %309 }
 0x181   : > { %3203 = vperm.xlu0 %3715, %v3018_v19   ;;  %v1375_v28 = vrot.slane %v1367_v20, %v4181_v15  ;;  %v3022_v30 = vcombine.low %v2313_v22, %v2317_v23  ;;  %v688_v31 = vrot.slane %v304_v14, %v4157_v6  ;;  %v692_v32 = vrot.slane %v304_v14, %v4160_v7 }
 0x182   : > { %v1382_v47 = vrot.slane %v1368_v24, %v4181_v15  ;;  %v3029_v33 = vrot.slane %v3019_v25, %v4181_v15  ;;  %v3036_v34 = vrot.slane %v3020_v26, %v4181_v15  ;;  %v3043_v35 = vrot.slane %v3021_v27, %v4181_v15 }
 0x183   : > { %v3050_v37 = vrot.slane %v3022_v30, %v4181_v15  ;;  %v696_v38 = vrot.slane %v304_v14, %v4163_v8  ;;  %v700_v39 = vrot.slane %v304_v14, %v4166_v9  ;;  %v704_v40 = vrot.slane %v304_v14, %v4169_v10 }
 0x184   : > { %v1383_v41 = vcombine.low %v1375_v28, %v1382_v47  ;;  %v3051_v42 = vcombine.low %v3029_v33, %v3036_v34  ;;  %v708_v43 = vrot.slane %v304_v14, %v4172_v11  ;;  %v712_v44 = vrot.slane %v304_v14, %v4175_v12 }
 0x185   : > { %v3052_v46 = vcombine.low %v3043_v35, %v3050_v37  ;;  %v716_v48 = vrot.slane %v304_v14, %v4178_v13  ;;  %v1384_v49 = vcombine.low %v688_v31, %v692_v32  ;;  %v1385_v50 = vcombine.low %v696_v38, %v700_v39 }
 0x186   : > { %1660 = vperm.xlu1 %3716, %v1383_v41   ;;  %v3059_v51 = vrot.slane %v3051_v42, %v4181_v15  ;;  %v1386_v29 = vcombine.low %v704_v40, %v708_v43  ;;  %v2353_v52 = vrot.slane %v1853_v36, %v4157_v6  ;;  %v2357_v53 = vrot.slane %v1853_v36, %v4160_v7  ;;  %v313_v42 = vpop.xlane.xlu0 %312 }
 0x187   : > { %v3066_v54 = vrot.slane %v3052_v46, %v4181_v15  ;;  %v1387_v55 = vcombine.low %v712_v44, %v716_v48  ;;  %v1394_v56 = vrot.slane %v1384_v49, %v4181_v15  ;;  %v1401_v57 = vrot.slane %v1385_v50, %v4181_v15 }
 0x188   : > { %v1408_v58 = vrot.slane %v1386_v29, %v4181_v15  ;;  %v2361_v59 = vrot.slane %v1853_v36, %v4163_v8  ;;  %v2365_v60 = vrot.slane %v1853_v36, %v4166_v9  ;;  %v2369_v61 = vrot.slane %v1853_v36, %v4169_v10 }
 0x189   : > { %v3067_v62 = vcombine.low %v3059_v51, %v3066_v54  ;;  %v1415_v63 = vrot.slane %v1387_v55, %v4181_v15  ;;  %v1416_v2 = vcombine.low %v1394_v56, %v1401_v57  ;;  %v2373_v3 = vrot.slane %v1853_v36, %v4172_v11 }
 0x18a   : > { %v2377_v5 = vrot.slane %v1853_v36, %v4175_v12  ;;  %v2381_v0 = vrot.slane %v1853_v36, %v4178_v13  ;;  %v3117_v14 = vcombine.low %v2353_v52, %v2357_v53  ;;  %v3118_v16 = vcombine.low %v2361_v59, %v2365_v60 }
 0x18b   : > { %3206 = vperm.xlu0 %3715, %v3067_v62   ;;  %v1417_v17 = vcombine.low %v1408_v58, %v1415_v63  ;;  %v1424_v18 = vrot.slane %v1416_v2, %v4181_v15  ;;  %v3119_v19 = vcombine.low %v2369_v61, %v2373_v3  ;;  %v720_v20 = vrot.slane %v307_v45, %v4157_v6 }
 0x18c   : > { %v3120_v22 = vcombine.low %v2377_v5, %v2381_v0  ;;  %v3127_v23 = vrot.slane %v3117_v14, %v4181_v15  ;;  %v3134_v24 = vrot.slane %v3118_v16, %v4181_v15  ;;  %v724_v25 = vrot.slane %v307_v45, %v4160_v7  ;;  %v316_v0 = vpop.xlane.xlu0 %315 }
 0x18d   : > { %v1431_v26 = vrot.slane %v1417_v17, %v4181_v15  ;;  %v3141_v27 = vrot.slane %v3119_v19, %v4181_v15  ;;  %v728_v28 = vrot.slane %v307_v45, %v4163_v8  ;;  %v732_v30 = vrot.slane %v307_v45, %v4166_v9 }
 0x18e   : > { %v3148_v31 = vrot.slane %v3120_v22, %v4181_v15  ;;  %v3149_v32 = vcombine.low %v3127_v23, %v3134_v24  ;;  %v736_v47 = vrot.slane %v307_v45, %v4169_v10  ;;  %v740_v33 = vrot.slane %v307_v45, %v4172_v11 }
 0x18f   : > { %v1432_v34 = vcombine.low %v1424_v18, %v1431_v26  ;;  %v744_v35 = vrot.slane %v307_v45, %v4175_v12  ;;  %v748_v36 = vrot.slane %v307_v45, %v4178_v13  ;;  %v1433_v37 = vcombine.low %v720_v20, %v724_v25 }
 0x190   : > { %v3150_v38 = vcombine.low %v3141_v27, %v3148_v31  ;;  %v3157_v39 = vrot.slane %v3149_v32, %v4181_v15  ;;  %v1434_v40 = vcombine.low %v728_v28, %v732_v30  ;;  %v1435_v41 = vcombine.low %v736_v47, %v740_v33 }
 0x191   : > { %1663 = vperm.xlu1 %3716, %v1432_v34   ;;  %v1436_v43 = vcombine.low %v744_v35, %v748_v36  ;;  %v1443_v44 = vrot.slane %v1433_v37, %v4181_v15  ;;  %v752_v46 = vrot.slane %v310_v21, %v4157_v6  ;;  %v756_v48 = vrot.slane %v310_v21, %v4160_v7 }
 0x192   : > { %v3164_v49 = vrot.slane %v3150_v38, %v4181_v15  ;;  %v1450_v50 = vrot.slane %v1434_v40, %v4181_v15  ;;  %v1457_v45 = vrot.slane %v1435_v41, %v4181_v15  ;;  %v760_v51 = vrot.slane %v310_v21, %v4163_v8 }
 0x193   : > { %v1464_v29 = vrot.slane %v1436_v43, %v4181_v15  ;;  %v764_v52 = vrot.slane %v310_v21, %v4166_v9  ;;  %v768_v53 = vrot.slane %v310_v21, %v4169_v10  ;;  %v772_v54 = vrot.slane %v310_v21, %v4172_v11 }
 0x194   : > { %v3165_v55 = vcombine.low %v3157_v39, %v3164_v49  ;;  %v1465_v56 = vcombine.low %v1443_v44, %v1450_v50  ;;  %v776_v57 = vrot.slane %v310_v21, %v4175_v12  ;;  %v780_v58 = vrot.slane %v310_v21, %v4178_v13  ;;  %v1850_v39 = vpop.xlane.xlu0 %1849 }
 0x195   : > { %v1466_v59 = vcombine.low %v1457_v45, %v1464_v29  ;;  %v1482_v60 = vcombine.low %v752_v46, %v756_v48  ;;  %v1483_v61 = vcombine.low %v760_v51, %v764_v52  ;;  %v1484_v62 = vcombine.low %v768_v53, %v772_v54 }
 0x196   : > { %3212 = vperm.xlu0 %3715, %v3165_v55   ;;  %v1473_v63 = vrot.slane %v1465_v56, %v4181_v15  ;;  %v1485_v2 = vcombine.low %v776_v57, %v780_v58  ;;  %v784_v3 = vrot.slane %v313_v42, %v4157_v6  ;;  %v788_v5 = vrot.slane %v313_v42, %v4160_v7 }
 0x197   : > { %v1480_v14 = vrot.slane %v1466_v59, %v4181_v15  ;;  %v1492_v16 = vrot.slane %v1482_v60, %v4181_v15  ;;  %v1499_v17 = vrot.slane %v1483_v61, %v4181_v15  ;;  %v1506_v21 = vrot.slane %v1484_v62, %v4181_v15 }
 0x198   : > { %v1513_v18 = vrot.slane %v1485_v2, %v4181_v15  ;;  %v792_v19 = vrot.slane %v313_v42, %v4163_v8  ;;  %v796_v20 = vrot.slane %v313_v42, %v4166_v9  ;;  %v800_v22 = vrot.slane %v313_v42, %v4169_v10 }
 0x199   : > { %v1481_v23 = vcombine.low %v1473_v63, %v1480_v14  ;;  %v1514_v24 = vcombine.low %v1492_v16, %v1499_v17  ;;  %v804_v25 = vrot.slane %v313_v42, %v4172_v11  ;;  %v808_v26 = vrot.slane %v313_v42, %v4175_v12 }
 0x19a   : > { %v1515_v27 = vcombine.low %v1506_v21, %v1513_v18  ;;  %v812_v28 = vrot.slane %v313_v42, %v4178_v13  ;;  %v1531_v30 = vcombine.low %v784_v3, %v788_v5  ;;  %v1532_v31 = vcombine.low %v792_v19, %v796_v20 }
 0x19b   : > { %1666 = vperm.xlu1 %3716, %v1481_v23   ;;  %v1522_v32 = vrot.slane %v1514_v24, %v4181_v15  ;;  %v1533_v47 = vcombine.low %v800_v22, %v804_v25  ;;  %v816_v33 = vrot.slane %v316_v0, %v4157_v6  ;;  %v820_v34 = vrot.slane %v316_v0, %v4160_v7 }
 0x19c   : > { %v1529_v35 = vrot.slane %v1515_v27, %v4181_v15  ;;  %v1534_v36 = vcombine.low %v808_v26, %v812_v28  ;;  %v1541_v37 = vrot.slane %v1531_v30, %v4181_v15  ;;  %v1548_v38 = vrot.slane %v1532_v31, %v4181_v15  ;;  %v3324_v30 = vld [vmem:[#allocation7] sm:$0xff]  ;;  %v1634_v31 = vpop.permute.xlu1 %1633 }
 0x19d   : > { %v1555_v40 = vrot.slane %v1533_v47, %v4181_v15  ;;  %v824_v41 = vrot.slane %v316_v0, %v4163_v8  ;;  %v828_v42 = vrot.slane %v316_v0, %v4166_v9  ;;  %v832_v43 = vrot.slane %v316_v0, %v4169_v10 }
 0x19e   : > { %v1530_v44 = vcombine.low %v1522_v32, %v1529_v35  ;;  %v1562_v46 = vrot.slane %v1534_v36, %v4181_v15  ;;  %v1563_v48 = vcombine.low %v1541_v37, %v1548_v38  ;;  %v836_v49 = vrot.slane %v316_v0, %v4172_v11  ;;  %v1631_v36 = vpop.permute.xlu0 %1630 }
 0x19f   : > { %v840_v50 = vrot.slane %v316_v0, %v4175_v12  ;;  %v844_v45 = vrot.slane %v316_v0, %v4178_v13  ;;  %v1580_v51 = vcombine.low %v816_v33, %v820_v34  ;;  %v1581_v29 = vcombine.low %v824_v41, %v828_v42 }
 0x1a0   : > { %1669 = vperm.xlu1 %3716, %v1530_v44   ;;  %v1564_v52 = vcombine.low %v1555_v40, %v1562_v46  ;;  %v1571_v53 = vrot.slane %v1563_v48, %v4181_v15  ;;  %v1582_v54 = vcombine.low %v832_v43, %v836_v49  ;;  %v2321_v55 = vrot.slane %v1850_v39, %v4157_v6  ;;  %v1637_v32 = vpop.permute.xlu1 %1636 }
 0x1a1   : > { %v1583_v56 = vcombine.low %v840_v50, %v844_v45  ;;  %v1590_v57 = vrot.slane %v1580_v51, %v4181_v15  ;;  %v1597_v58 = vrot.slane %v1581_v29, %v4181_v15  ;;  %v2325_v59 = vrot.slane %v1850_v39, %v4160_v7 }
 0x1a2   : > { %v1578_v60 = vrot.slane %v1564_v52, %v4181_v15  ;;  %v1604_v61 = vrot.slane %v1582_v54, %v4181_v15  ;;  %v2329_v62 = vrot.slane %v1850_v39, %v4163_v8  ;;  %v2333_v63 = vrot.slane %v1850_v39, %v4166_v9  ;;  %v3177_v38 = vpop.permute.xlu0 %3176 }
 0x1a3   : > { %v1611_v2 = vrot.slane %v1583_v56, %v4181_v15  ;;  %v1612_v3 = vcombine.low %v1590_v57, %v1597_v58  ;;  %v2337_v6 = vrot.slane %v1850_v39, %v4169_v10  ;;  %v2341_v5 = vrot.slane %v1850_v39, %v4172_v11 }
 0x1a4   : > { %v1579_v0 = vcombine.low %v1571_v53, %v1578_v60  ;;  %v2345_v14 = vrot.slane %v1850_v39, %v4175_v12  ;;  %v2349_v7 = vrot.slane %v1850_v39, %v4178_v13  ;;  %v3068_v16 = vcombine.low %v2321_v55, %v2325_v59  ;;  %v1640_v47 = vpop.permute.xlu1 %1639 }
 0x1a5   : > { %v1613_v17 = vcombine.low %v1604_v61, %v1611_v2  ;;  %v1620_v21 = vrot.slane %v1612_v3, %v4181_v15  ;;  %v3069_v18 = vcombine.low %v2329_v62, %v2333_v63  ;;  %v3070_v8 = vcombine.low %v2337_v6, %v2341_v5 }
 0x1a6   : > { %1672 = vperm.xlu1 %3716, %v1579_v0   ;;  %v3071_v9 = vcombine.low %v2345_v14, %v2349_v7  ;;  %v3078_v19 = vrot.slane %v3068_v16, %v4181_v15  ;;  %v3902_v27 = vmov -inf   ;;  %v3903_v28 = vmov 0.0  }
 0x1a7   : > { %v1627_v20 = vrot.slane %v1613_v17, %v4181_v15  ;;  %v3085_v10 = vrot.slane %v3069_v18, %v4181_v15  ;;  %v3092_v11 = vrot.slane %v3070_v8, %v4181_v15  ;;  %235 = vst [vmem:[#allocation3] sm:$0x1] %v3902_v27  ;;  %234 = vst [vmem:[#allocation2] sm:$0x1] %v3903_v28  ;;  %3615 = vmatprep.subr.mxu0 %v3903_v28 }
 0x1a8   : > { %v3099_v12 = vrot.slane %v3071_v9, %v4181_v15  ;;  %3620 = vmatprep.subr.mxu1 %v3903_v28  ;;  %3616 = vmatpush3.xpose.msra.mxu0 %v3324_v30  ;;  %v3168_v33 = vpop.permute.xlu1 %3167  ;;  %v4684_v45 = vand.u32 127, %v333_v1 }
 0x1a9   : > { %v1628_v22 = vcombine.low %v1620_v21, %v1627_v20  ;;  %v3100_v13 = vcombine.low %v3078_v19, %v3085_v10  ;;  %3617 = vmatprep.mubr.msk.f32.mxu0 %vm3904_vm0, %v3903_v28  ;;  %3622 = vmatprep.mubr.msk.f32.mxu1 %vm3904_vm0, %v3903_v28  ;;  %vm3322_vm0 = vcmask 1040384  }
 0x1aa   : > { %v3101_v23 = vcombine.low %v3092_v11, %v3099_v12  ;;  %v1683_v51 = vadd.s32 4294967288, %v4684_v45  ;;  %v1690_v29 = vadd.s32 4294967280, %v4684_v45  ;;  %v1697_v53 = vadd.s32 4294967272, %v4684_v45 }
 0x1ab   : > { %1675 = vperm.xlu1 %3716, %v1628_v22   ;;  %v3108_v24 = vrot.slane %v3100_v13, %v4181_v15  ;;  %v1681_v57 = vsub.s32 %v4684_v45, %v4154_v4  ;;  %v1704_v60 = vadd.s32 4294967264, %v4684_v45  ;;  %v1711_v3 = vadd.s32 4294967256, %v4684_v45 }
 0x1ac   : > { %v3115_v25 = vrot.slane %v3101_v23, %v4181_v15  ;;  %v4665_v40 = vpop.permute.xlu0 %3179  ;;  %v1686_v55 = vsub.s32 %v1683_v51, %v4154_v4  ;;  %v1693_v56 = vsub.s32 %v1690_v29, %v4154_v4  ;;  %v1700_v1 = vsub.s32 %v1697_v53, %v4154_v4 }
 0x1ad   : > { %v1682_v63 = vrot.slane %v1631_v36, %v1681_v57  ;;  %v3217_v14 = vrot.slane %v3168_v33, %v1681_v57  ;;  %v1707_v7 = vsub.s32 %v1704_v60, %v4154_v4  ;;  %v1718_v16 = vadd.s32 4294967248, %v4684_v45 }
 0x1ae   : > { %v3116_v26 = vcombine.low %v3108_v24, %v3115_v25  ;;  %v1687_v59 = vrot.slane %v1634_v31, %v1686_v55  ;;  %v1694_v61 = vrot.slane %v1637_v32, %v1693_v56  ;;  %v1701_v6 = vrot.slane %v1640_v47, %v1700_v1 }
 0x1af   : > { %v3231_v21 = vrot.slane %v3177_v38, %v1700_v1  ;;  %v3236_v9 = vrot.slane %v4665_v40, %v1707_v7  ;;  %v1714_v19 = vsub.s32 %v1711_v3, %v4154_v4  ;;  %v1725_v20 = vadd.s32 4294967240, %v4684_v45 }
 0x1b0   : > { %3209 = vperm.xlu1 %3716, %v3116_v26   ;;  %v1689_v0 = vsel %vm1688_vm1, %v1687_v59, %v1682_v63  ;;  %v1732_v12 = vadd.s32 4294967232, %v4684_v45  ;;  %v1721_v13 = vsub.s32 %v1718_v16, %v4154_v4  ;;  %v1739_v23 = vadd.s32 4294967224, %v4684_v45 }
 0x1b1   : > { %v3171_v34 = vpop.permute.xlu1 %3170  ;;  %v1696_v17 = vsel %vm1695_vm2, %v1694_v61, %v1689_v0  ;;  %v1746_v24 = vadd.s32 4294967216, %v4684_v45  ;;  %v1753_v26 = vadd.s32 4294967208, %v4684_v45  ;;  %v1728_v30 = vsub.s32 %v1725_v20, %v4154_v4 }
 0x1b2   : > { %v3221_v2 = vrot.slane %v3171_v34, %v1686_v55  ;;  %v1703_v10 = vsel %vm1702_vm3, %v1701_v6, %v1696_v17  ;;  %v1735_v47 = vsub.s32 %v1732_v12, %v4154_v4  ;;  %v1760_v33 = vadd.s32 4294967200, %v4684_v45 }
 0x1b3   : > { %v1774_v34 = vadd.s32 4294967184, %v4684_v45  ;;  %v1742_v36 = vsub.s32 %v1739_v23, %v4154_v4  ;;  %v1767_v38 = vadd.s32 4294967192, %v4684_v45  ;;  %v1756_v51 = vsub.s32 %v1753_v26, %v4154_v4  ;;  %v268_v26 = vld [vmem:[#allocation2] sm:$0x1] }
 0x1b4   : > { %v3222_v8 = vsel %vm1688_vm1, %v3221_v2, %v3217_v14  ;;  %v1763_v59 = vsub.s32 %v1760_v33, %v4154_v4  ;;  %vm3397_vm1 = vcmask 64512  }
 0x1b5   : > { %v1777_v60 = vsub.s32 %v1774_v34, %v4154_v4  ;;  %v1770_v63 = vsub.s32 %v1767_v38, %v4154_v4 }
 0x1b6   : > { %v4669_v42 = vpop.permute.xlu0 %3182 }
 0x1b7   : > { %v3241_v53 = vrot.slane %v4669_v42, %v1714_v19 }
 0x1bc   : > { %v4661_v35 = vpop.permute.xlu1 %1642 }
 0x1bd   : > { %v1708_v25 = vrot.slane %v4661_v35, %v1707_v7 }
 0x1c1   : > { %v4673_v44 = vpop.permute.xlu0 %3185 }
 0x1c6   : > { %v3174_v37 = vpop.permute.xlu1 %3173 }
 0x1c7   : > { %v3226_v5 = vrot.slane %v3174_v37, %v1693_v56  ;;  %v1749_v37 = vsub.s32 %v1746_v24, %v4154_v4  ;;  %v1781_v56 = vadd.s32 4294967176, %v4684_v45 }
 0x1c9   : > { %v3227_v11 = vsel %vm1695_vm2, %v3226_v5, %v3222_v8 }
 0x1ca   : > { %v3232_v27 = vsel %vm1702_vm3, %v3231_v21, %v3227_v11  ;;  %v1784_v21 = vsub.s32 %v1781_v56, %v4154_v4 }
 0x1cb   : > { %v4677_v48 = vpop.permute.xlu0 %3188  ;;  %v3237_v40 = vsel %vm1709_vm4, %v3236_v9, %v3232_v27 }
 0x1cc   : > { %v3251_v3 = vrot.slane %v4677_v48, %v1728_v30 }
 0x1d1   : > { %v4663_v39 = vpop.permute.xlu1 %1645 }
 0x1d2   : > { %v1715_v28 = vrot.slane %v4663_v39, %v1714_v19  ;;  %v1710_v39 = vsel %vm1709_vm4, %v1708_v25, %v1703_v10 }
 0x1d4   : > { %v1717_v55 = vsel %vm1716_vm5, %v1715_v28, %v1710_v39 }
 0x1d6   : > { %v4681_v50 = vpop.permute.xlu0 %3191 }
 0x1db   : > { %v4667_v41 = vpop.permute.xlu1 %1648 }
 0x1dc   : > { %v1722_v32 = vrot.slane %v4667_v41, %v1721_v13 }
 0x1de   : > { %v1724_v57 = vsel %vm1723_vm6, %v1722_v32, %v1717_v55 }
 0x1e0   : > { %v4691_v54 = vpop.permute.xlu0 %3194 }
 0x1e6   : > { %v4671_v43 = vpop.permute.xlu1 %1651 }
 0x1e7   : > { %v1729_v35 = vrot.slane %v4671_v43, %v1728_v30 }
 0x1e9   : > { %v1731_v61 = vsel %vm1730_vm7, %v1729_v35, %v1724_v57 }
 0x1eb   : > { %v4701_v62 = vpop.permute.xlu0 %3197 }
 0x1ec   : > { %v3266_v48 = vrot.slane %v4701_v62, %v1749_v37 }
 0x1f0   : > { %v4675_v46 = vpop.permute.xlu1 %1654 }
 0x1f1   : > { %v1736_v41 = vrot.slane %v4675_v46, %v1735_v47  ;;  %v3242_v46 = vsel %vm1716_vm5, %v3241_v53, %v3237_v40 }
 0x1f3   : > { %v1738_v45 = vsel %vm1737_vm8, %v1736_v41, %v1731_v61 }
 0x1f5   : > { %v4717_v22 = vpop.permute.xlu0 %3200 }
 0x1f6   : > { %v3271_v9 = vrot.slane %v4717_v22, %v1756_v51 }
 0x1fb   : > { %v4679_v49 = vpop.permute.xlu1 %1657 }
 0x1fc   : > { %v1743_v43 = vrot.slane %v4679_v49, %v1742_v36  ;;  %v3246_v49 = vrot.slane %v4673_v44, %v1721_v13  ;;  %v3261_v44 = vrot.slane %v4691_v54, %v1742_v36  ;;  %v1805_v36 = vld [vmem:[#allocation3] sm:$0x1] }
 0x1fe   : > { %v1745_v6 = vsel %vm1744_vm9, %v1743_v43, %v1738_v45  ;;  %v3247_v0 = vsel %vm1723_vm6, %v3246_v49, %v3242_v46 }
 0x200   : > { %v3204_v29 = vpop.permute.xlu0 %3203 }
 0x201   : > { %v3276_v10 = vrot.slane %v3204_v29, %v1763_v59  ;;  %v3396_v29 = vld [vmem:[#allocation9] sm:$0xff] }
 0x202   : > { %3621 = vmatpush3.msra.mxu1 %v3396_v29 }
 0x205   : > { %v4688_v52 = vpop.permute.xlu1 %1660 }
 0x206   : > { %v1750_v1 = vrot.slane %v4688_v52, %v1749_v37 }
 0x208   : > { %v1752_v14 = vsel %vm1751_vm10, %v1750_v1, %v1745_v6 }
 0x20a   : > { %v3207_v7 = vpop.permute.xlu0 %3206 }
 0x20b   : > { %v3281_v62 = vrot.slane %v3207_v7, %v1770_v63 }
 0x210   : > { %v4698_v58 = vpop.permute.xlu1 %1663 }
 0x211   : > { %v1757_v42 = vrot.slane %v4698_v58, %v1756_v51  ;;  %v3256_v58 = vrot.slane %v4681_v50, %v1735_v47  ;;  %v3252_v50 = vsel %vm1730_vm7, %v3251_v3, %v3247_v0 }
 0x213   : > { %v1759_v17 = vsel %vm1758_vm11, %v1757_v42, %v1752_v14  ;;  %v3257_v54 = vsel %vm1737_vm8, %v3256_v58, %v3252_v50 }
 0x214   : > { %v3262_v11 = vsel %vm1744_vm9, %v3261_v44, %v3257_v54 }
 0x215   : > { %v3267_v13 = vsel %vm1751_vm10, %v3266_v48, %v3262_v11  ;;  %v3213_v23 = vpop.permute.xlu0 %3212 }
 0x216   : > { %v3272_v22 = vsel %vm1758_vm11, %v3271_v9, %v3267_v13  ;;  %v3291_v32 = vrot.slane %v3213_v23, %v1784_v21 }
 0x217   : > { %v3277_v27 = vsel %vm1765_vm12, %v3276_v10, %v3272_v22 }
 0x21a   : > { %v4708_v18 = vpop.permute.xlu1 %1666 }
 0x21b   : > { %v1764_v52 = vrot.slane %v4708_v18, %v1763_v59 }
 0x21d   : > { %v1766_v18 = vsel %vm1765_vm12, %v1764_v52, %v1759_v17 }
 0x21f   : > { %v1670_v31 = vpop.permute.xlu1 %1669 }
 0x220   : > { %v1771_v5 = vrot.slane %v1670_v31, %v1770_v63  ;;  %v3282_v31 = vsel %vm1772_vm14, %v3281_v62, %v3277_v27 }
 0x222   : > { %v1773_v19 = vsel %vm1772_vm14, %v1771_v5, %v1766_v18 }
 0x225   : > { %v1673_v2 = vpop.permute.xlu1 %1672 }
 0x226   : > { %v1778_v16 = vrot.slane %v1673_v2, %v1777_v60 }
 0x228   : > { %v1780_v4 = vsel %vm1779_vm13, %v1778_v16, %v1773_v19 }
 0x22a   : > { %v1676_v8 = vpop.permute.xlu1 %1675 }
 0x22b   : > { %v1785_v20 = vrot.slane %v1676_v8, %v1784_v21 }
 0x22d   : > { %v1787_v12 = vsel %vm1786_vm15, %v1785_v20, %v1780_v4 }
 0x22e   : > { %v1794_v24 = vrot.slane %v1787_v12, %v4181_v15 }
 0x22f   : > { %v3210_v25 = vpop.permute.xlu1 %3209 }
 0x230   : > { %v1801_v28 = vrot.slane %v1794_v24, %v4181_v15  ;;  %v3286_v30 = vrot.slane %v3210_v25, %v1777_v60 }
 0x232   : > { %v3287_v47 = vsel %vm1779_vm13, %v3286_v30, %v3282_v31  ;;  %v1803_v33 = vadd.f32 %v1801_v28, %v268_v26 }
 0x233   : > { %v3292_v34 = vsel %vm1786_vm15, %v3291_v32, %v3287_v47 }
 0x234   : > { %v3299_v35 = vrot.slane %v3292_v34, %v4181_v15  ;;  %1804 = vst [vmem:[#allocation2] sm:$0x1] %v1803_v33 }
 0x236   : > { %v3306_v37 = vrot.slane %v3299_v35, %v4181_v15 }
 0x238   : > { %v3308_v38 = vmax.f32 %v1805_v36, %v3306_v37 }
 0x23a   : > { %3309 = vst [vmem:[#allocation3] sm:$0x1] %v3308_v38 }
 0x23b   : > { %v3313_v39 = vld [vmem:[#allocation2] sm:$0x1] }
 0x23c   : > { %v3314_v40 = vmul.f32 0.00390625, %v3313_v39 }
 0x241   : > { %v3604_v41 = vld [vmem:[#allocation3] ss:$0 sm:$0xff] }
 0x242   : > { %v3323_v51 = vsel %vm3322_vm0, %v3314_v40, %v3604_v41 }
 0x243   : > { %3618 = vmatmul.mubr.f32.vlgmr.msra.gmra.mrb[0].mxu0 %v3323_v51 }
 0x316   : > { %v3391_v53 = vpop.f32.mrb[0].mxu0 }
 0x317   : > { %v3395_v55 = vmax.f32 %v3391_v53, 0.0  ;;  %v3619_v43 = vpop.f32.mrb[1].mxu0 }
 0x319   : > { %3623 = vmatmul.mubr.msk.f32.vlgmr.msra.gmra.mrb[0].mxu1 %vm3397_vm1, %v3395_v55 }
 0x3ec   : > { %v3467_v56 = vpop.f32.mrb[0].mxu1 }
 0x3ed   : > { %v3472_v15 = vrot.slane %v3467_v56, 1  ;;  %v3624_v57 = vpop.f32.mrb[1].mxu1 }
 0x3ef   : > { %v3474_v1 = vadd.f32 %v3472_v15, %v3467_v56 }
 0x3f1   : > { %v3606_v59 = vmul.f32 -1.442695, %v3474_v1 }
 0x3f3   : > { %3717 = vpow2.f32 %v3606_v59 }
 0x3fd   : > { %v3718_v60 = vpop.eup %3717 }
 0x3fe   : > { %v3478_v46 = vadd.f32 1.0, %v3718_v60 }
 0x400   : > { %3719 = vrcp.f32 %v3478_v46 }
 0x40a   : > { %v3720_v61 = vpop.eup %3719 }
 0x40b   : > { %3481 = vst [vmem:[%s228_s23] sm:$0x1] %v3720_v61 }
 0x40c   : > { %3820 = shalt.err (!%p3817_p9)
}
 0x40d   : > { %s3821_s4 = scalar_lea.hbm %s4786_s10, 16  ;;  %s3825_s6 = scalar_lea.hbm %s4838_s3, 32 }
 0x40e   : > { %p3822_p8 = scmp.ne.s32.totalorder %s4786_s10, %s3821_s4  ;;  %p3826_p7 = scmp.lt.u32.totalorder %s4786_s10, %s4838_s3 }
 0x40f   : > { %p3827_p12 = scmp.lt.u32.totalorder %s3825_s6, %s3821_s4  ;;  %p3829_p5 = scmp.lt.u32.totalorder %s3821_s4, %s4786_s10 }
 0x410   : > { %p3823_p13 = pnand %p3822_p8, %p4857_p10 }
 0x411   : > { %p3828_p3 = por %p3827_p12, %p3826_p7 }
 0x412   : > { %p3824_p4 = pneg %p3823_p13 }
 0x413   : > { %p3830_p11 = por %p3829_p5, %p3828_p3 }
 0x415   : > { %p3831_p1 = pnand %p3830_p11, %p3824_p4 }
 0x417   : > { %3834 = shalt.err (!%p3831_p1)
}
 0x418   : > { %3635 = dma.vmem_to_hbm [thread:$0]  (%p4857_p10), %s4788_s26, 16, %s4786_s10, %s3483_s28  }
 0x419 PF: > { %s3507_s7 = sand.u32 1, %s3873_s12   ;;  %p4858_p0 = scmp.ne.s32.totalorder %s4849_s25, 0 }
 0x41a   : > { %p4859_p6 = scmp.ge.s32.totalorder %s3893_s17, 2  ;;  %s3508_s21 = scalar_lea.sflag [#allocation6], %s3507_s7 }
 0x41c   : > { %p3649_p2 = pnand %p4859_p6, %p4858_p0 }
 0x41e   : > { %3868 = dma.done.wait (!%p3649_p2), %s3508_s21, 16  }
 0x41f   : > { %3870 = vsyncadd (!%p3649_p2), %s3508_s21, 4294967280  ;;  %s20_s17 = sadd.s32 1, %s3893_s17   ;;  %s4860_s12 = smov %s3877_s13 }
 0x420   : > { %p17_p9 = scmp.ge.s32.totalorder %s20_s17, 4   ;;  %s4861_s13 = smov %s3881_s14 }
 0x421   : > { %s4862_s14 = smov %s4074_s11  ;;  %s4863_s15 = smov %s3889_s16 }
 0x422   : > { %s4864_s16 = smov %s4866_s22  ;;  %19 = sbr.rel (!%p17_p9) target bundleno = 7 (0x7), region = 93 }
 0x429   :  { %3512 = vsyncpa [#allocation5], 1 }
 0x42a   :  { %3514 = vsyncpa [#allocation5 + $0x1], 1 }
 0x42b   :  { %3515 = vsyncpa [#allocation8], 1 }
 0x42c   :  { %3516 = vsyncpa [#allocation6], 1 }
 0x42d   :  { %3518 = vsyncpa [#allocation6 + $0x1], 1 }

</bundles_post_ra>
